<compile_context>
chip_gen: v5e
topology: v5e:2x2
jax: 0.10.0
libtpu: 0.0.40
codegen_flags: <defaults>
</compile_context>

<pallas_src>
import functools
import math

import jax
import jax.numpy as jnp
from jax.experimental import pallas as pl
from jax.experimental.pallas import tpu as pltpu


def _block_kernel(x_ref,
                  sgw_ref, sgb_ref,    # per-delay fused signal|gate conv: (S, K, 2*C_gate, C_res), (S, 2*C_gate, 1)
                  outw_ref, outb_ref,  # 1x1 output conv per sub-block:    (S, C_res, C_gate), (S, C_res, 1)
                  skw_ref, skb_ref,    # skip 1x1 conv:                    (C_skip, C_res), (C_skip, 1)
                  dilw_ref, dilb_ref,  # dilated conv (k=2, stride 2):     (2, C_res, C_res), (C_res, 1)
                  z_ref, skip_ref,     # outputs: (BT, C_res, T_out), (BT, C_skip, 1)  (NCW, lane-dense time)
                  ypad_ref,            # scratch: (C_res, pad + T) f32, lane cols [0, pad) stay zero
                  *, sub_blocks, kernels, pad):
    bt, c_res, t = x_ref.shape
    c_gate = outw_ref.shape[-1]
    t_out = z_ref.shape[-1]
    mm = sgw_ref.dtype                      # bf16 MXU operand dtype

    # Zero the causal padding columns once; never overwritten (all rows reuse the same scratch).
    ypad_ref[:, pl.ds(0, pad)] = jnp.zeros((c_res, pad), ypad_ref.dtype)

    # Exact 0/1 even-column selector for the stride-2 dilated conv (f32 -> selection is exact).
    sel = (jax.lax.broadcasted_iota(jnp.int32, (t, t_out), 0)
           == 2 * jax.lax.broadcasted_iota(jnp.int32, (t, t_out), 1)).astype(jnp.float32)

    def tap(d):
        # y[:, t - d] with causal zeros (reads the zero pad columns for t < d).
        return ypad_ref[:, pl.ds(pad - d, t)].astype(mm)

    for b in range(bt):                      # batch rows of this grid step (sequential, share the scratch)
        y = x_ref[b].astype(jnp.float32)     # (C_res, T) residual stream kept in f32

        # ---- n x SubBlock: causal conv (signal|gate) -> relu*sigmoid -> 1x1 conv -> +x ----
        for s in range(sub_blocks):
            ypad_ref[:, pl.ds(pad, t)] = y   # lane-aligned publish (pad % 128 == 0)
            sg = sgb_ref[s] + jnp.dot(sgw_ref[s, 0], y.astype(mm),
                                      preferred_element_type=jnp.float32)
            for d in range(1, kernels):      # accumulated per-tap dots (no concat relayout)
                sg = sg + jnp.dot(sgw_ref[s, d], tap(d),
                                  preferred_element_type=jnp.float32)
            # Gating math kept in f32 (v5e has no bf16 VPU/EUP); cast only at the MXU boundary.
            h = jnp.maximum(sg[:c_gate, :], 0.0) * jax.nn.sigmoid(sg[c_gate:, :])
            y = y + outb_ref[s] + jnp.dot(outw_ref[s], h.astype(mm),
                                          preferred_element_type=jnp.float32)

        # ---- skip: 1x1 conv applied to the last timestep only ----
        skip_ref[b] = (skb_ref[...] +
                       jnp.dot(skw_ref[...], y[:, t - 1:t].astype(mm),
                               preferred_element_type=jnp.float32)).astype(skip_ref.dtype)

        # ---- dilated conv (kernel=2, stride=2, left pad 1) ----
        # u[:, tau] = W1 @ y[:, tau] + W0 @ y[:, tau-1] + b ;  z[:, t'] = u[:, 2*t'].
        ypad_ref[:, pl.ds(pad, t)] = y       # publish final residual stream for the shift-1 tap
        u = (dilb_ref[...] +
             jnp.dot(dilw_ref[1], y.astype(mm), preferred_element_type=jnp.float32) +
             jnp.dot(dilw_ref[0], tap(1), preferred_element_type=jnp.float32))
        # Even-column selection on the MXU (exact 0/1 matrix); avoids lane-strided loads and
        # keeps z lane-dense & already NCW.
        z_ref[b] = jnp.dot(u, sel, preferred_element_type=jnp.float32).astype(z_ref.dtype)


def block_forward(x_ncw, torch_params, *, sub_blocks, kernels):
    """PyTorch-equivalent Block.forward.

    x_ncw: (B, C_res, T) -> ((B, C_res, (T+1)//2), (B, C_skip, 1)).
    torch_params: Conv1d-layout (O, I, K) weights / (O,) biases, see __main__.
    """
    (sig_w_t, sig_b_t, gate_w_t, gate_b_t, out_w_t, out_b_t,
     skip_w_t, skip_b_t, dil_w_t, dil_b_t) = torch_params

    B, C_res, T = x_ncw.shape
    S, K = sub_blocks, kernels
    C_gate = sig_w_t.shape[1]
    C_skip = skip_w_t.shape[0]
    T_out = (T + 1) // 2
    LANE = 128
    pad = LANE * (-(-max(K - 1, 1) // LANE))     # lane-aligned causal pad (>= K-1 and >= 1)
    mm_dtype = jnp.bfloat16

    # ---- wrapper-side layout plumbing: per-delay fused sig|gate, bf16 MXU weights ----
    sg_w = jnp.concatenate([sig_w_t, gate_w_t], axis=1)                 # (S, 2*C_gate, C_res, K)
    sg_w = jnp.transpose(jnp.flip(sg_w, axis=-1), (0, 3, 1, 2))         # (S, K, 2*C_gate, C_res), idx 1 = delay
    sg_w = sg_w.astype(mm_dtype)
    sg_b = jnp.concatenate([sig_b_t, gate_b_t], axis=-1)[..., None].astype(jnp.float32)   # (S, 2*C_gate, 1)
    out_w = out_w_t[..., 0].astype(mm_dtype)                            # (S, C_res, C_gate)
    out_b = out_b_t[..., None].astype(jnp.float32)                      # (S, C_res, 1)
    skip_w = skip_w_t[..., 0].astype(mm_dtype)                          # (C_skip, C_res)
    skip_b = skip_b_t[:, None].astype(jnp.float32)                      # (C_skip, 1)
    dil_w = jnp.transpose(dil_w_t, (2, 0, 1)).astype(mm_dtype)          # (2, C_res, C_res)
    dil_b = dil_b_t[:, None].astype(jnp.float32)                        # (C_res, 1)

    # Several batch rows per grid step (amortize per-step overhead, burst-size the DMAs).
    BT = next(c for c in (8, 4, 2, 1) if B % c == 0)

    kernel = functools.partial(_block_kernel, sub_blocks=S, kernels=K, pad=pad)

    def full(shape):                     # whole-array block, constant index -> fetched once
        n = len(shape)
        return pl.BlockSpec(shape, lambda i, n=n: (0,) * n)

    # Explicit VMEM budget: double-buffered activation/weight blocks + scratch + headroom.
    def nbytes(shape, dt):
        return math.prod(shape) * jnp.dtype(dt).itemsize
    weight_b = (nbytes(sg_w.shape, mm_dtype) + nbytes(sg_b.shape, jnp.float32) +
                nbytes(out_w.shape, mm_dtype) + nbytes(out_b.shape, jnp.float32) +
                nbytes(skip_w.shape, mm_dtype) + nbytes(skip_b.shape, jnp.float32) +
                nbytes(dil_w.shape, mm_dtype) + nbytes(dil_b.shape, jnp.float32))
    act_b = (nbytes((BT, C_res, T), x_ncw.dtype) +
             nbytes((BT, C_res, T_out), x_ncw.dtype) + nbytes((BT, C_skip, 1), x_ncw.dtype))
    scratch_b = nbytes((C_res, pad + T), jnp.float32)
    vmem_bytes = int(min(max(2 * (weight_b + act_b) + scratch_b + (8 << 20), 16 << 20), 64 << 20))

    z, skip = pl.pallas_call(
        kernel,
        grid=(B // BT,),
        out_shape=(jax.ShapeDtypeStruct((B, C_res, T_out), x_ncw.dtype),
                   jax.ShapeDtypeStruct((B, C_skip, 1), x_ncw.dtype)),
        in_specs=[
            pl.BlockSpec((BT, C_res, T), lambda i: (i, 0, 0)),          # x: BT batch rows / step, NCW
            full((S, K, 2 * C_gate, C_res)), full((S, 2 * C_gate, 1)),
            full((S, C_res, C_gate)), full((S, C_res, 1)),
            full((C_skip, C_res)), full((C_skip, 1)),
            full((2, C_res, C_res)), full((C_res, 1)),
        ],
        out_specs=(pl.BlockSpec((BT, C_res, T_out), lambda i: (i, 0, 0)),
                   pl.BlockSpec((BT, C_skip, 1), lambda i: (i, 0, 0))),
        scratch_shapes=[pltpu.VMEM((C_res, pad + T), jnp.float32)],
        compiler_params=pltpu.CompilerParams(
            dimension_semantics=("parallel",),
            vmem_limit_bytes=vmem_bytes),
    )(x_ncw, sg_w, sg_b, out_w, out_b, skip_w, skip_b, dil_w, dil_b)

    return z, skip


# ---------------- pure-JAX reference (mirrors PyTorch Conv1d / NCW semantics) ----------------
def _conv1d_ref(x, w, b, stride=1, pad_left=0):
    # x: (B, Cin, T), w: (Cout, Cin, K), b: (Cout,)
    if pad_left:
        x = jnp.pad(x, ((0, 0), (0, 0), (pad_left, 0)))
    out = jax.lax.conv_general_dilated(
        x, w, window_strides=(stride,), padding='VALID',
        dimension_numbers=('NCH', 'OIH', 'NCH'))
    return out + b[None, :, None]


if __name__ == "__main__":
    # Small shapes consistent with the module
    B, T = 2, 16
    sub_blocks, kernels = 2, 3
    gate_channels, residual_channels, skip_channels = 8, 4, 8

    key = jax.random.PRNGKey(0)
    ks = jax.random.split(key, 12)
    scale = 0.1

    # Parameters in PyTorch Conv1d layout (O, I, K)
    sig_w_t = scale * jax.random.normal(ks[0], (sub_blocks, gate_channels, residual_channels, kernels), jnp.float32)
    sig_b_t = scale * jax.random.normal(ks[1], (sub_blocks, gate_channels), jnp.float32)
    gate_w_t = scale * jax.random.normal(ks[2], (sub_blocks, gate_channels, residual_channels, kernels), jnp.float32)
    gate_b_t = scale * jax.random.normal(ks[3], (sub_blocks, gate_channels), jnp.float32)
    out_w_t = scale * jax.random.normal(ks[4], (sub_blocks, residual_channels, gate_channels, 1), jnp.float32)
    out_b_t = scale * jax.random.normal(ks[5], (sub_blocks, residual_channels), jnp.float32)
    skip_w_t = scale * jax.random.normal(ks[6], (skip_channels, residual_channels, 1), jnp.float32)
    skip_b_t = scale * jax.random.normal(ks[7], (skip_channels,), jnp.float32)
    dil_w_t = scale * jax.random.normal(ks[8], (residual_channels, residual_channels, 2), jnp.float32)
    dil_b_t = scale * jax.random.normal(ks[9], (residual_channels,), jnp.float32)

    x_ncw = jax.random.normal(ks[11], (B, residual_channels, T), jnp.float32)

    params = (sig_w_t, sig_b_t, gate_w_t, gate_b_t, out_w_t, out_b_t,
              skip_w_t, skip_b_t, dil_w_t, dil_b_t)

    y_dil, skip = block_forward(x_ncw, params, sub_blocks=sub_blocks, kernels=kernels)
    jax.block_until_ready((y_dil, skip))

    # Reference (PyTorch semantics in NCW, f32)
    y = x_ncw
    for s in range(sub_blocks):
        y_sig = jax.nn.relu(_conv1d_ref(y, sig_w_t[s], sig_b_t[s], pad_left=kernels - 1))
        y_gate = jax.nn.sigmoid(_conv1d_ref(y, gate_w_t[s], gate_b_t[s], pad_left=kernels - 1))
        y = _conv1d_ref(y_sig * y_gate, out_w_t[s], out_b_t[s]) + y
    skip_ref = _conv1d_ref(y[:, :, -1:], skip_w_t, skip_b_t)
    y_dil_ref = _conv1d_ref(y, dil_w_t, dil_b_t, stride=2, pad_left=1)

    assert y_dil.shape == y_dil_ref.shape, (y_dil.shape, y_dil_ref.shape)
    assert skip.shape == skip_ref.shape, (skip.shape, skip_ref.shape)
    assert jnp.allclose(y_dil, y_dil_ref, rtol=1e-2, atol=1e-2)
    assert jnp.allclose(skip, skip_ref, rtol=1e-2, atol=1e-2)

    print("KERNEL_OK")
</pallas_src>

<mosaic_0001>
module attributes {stable_mosaic.version = 11 : i64} {
  func.func @_block_kernel(%arg0: i32, %arg1: memref<2x4x16xf32, #tpu.memory_space<vmem>>, %arg2: memref<2x3x16x4xbf16, #tpu.memory_space<vmem>>, %arg3: memref<2x16x1xf32, #tpu.memory_space<vmem>>, %arg4: memref<2x4x8xbf16, #tpu.memory_space<vmem>>, %arg5: memref<2x4x1xf32, #tpu.memory_space<vmem>>, %arg6: memref<8x4xbf16, #tpu.memory_space<vmem>>, %arg7: memref<8x1xf32, #tpu.memory_space<vmem>>, %arg8: memref<2x4x4xbf16, #tpu.memory_space<vmem>>, %arg9: memref<4x1xf32, #tpu.memory_space<vmem>>, %arg10: memref<2x4x8xf32, #tpu.memory_space<vmem>>, %arg11: memref<2x8x1xf32, #tpu.memory_space<vmem>>, %arg12: memref<4x144xf32, #tpu.memory_space<vmem>>) attributes {dimension_semantics = [#tpu.dimension_semantics<parallel>], iteration_bounds = array<i64: 1>, scalar_prefetch = 0 : i64, scratch_operands = 1 : i64, tpu.core_type = #tpu.core_type<tc>, window_params = [{transform_indices = @transform_0, window_bounds = array<i64: 2, 4, 16>}, {pipeline_mode = #tpu.pipeline_mode<synchronous>, transform_indices = @transform_1, window_bounds = array<i64: 2, 3, 16, 4>}, {pipeline_mode = #tpu.pipeline_mode<synchronous>, transform_indices = @transform_2, window_bounds = array<i64: 2, 16, 1>}, {pipeline_mode = #tpu.pipeline_mode<synchronous>, transform_indices = @transform_3, window_bounds = array<i64: 2, 4, 8>}, {pipeline_mode = #tpu.pipeline_mode<synchronous>, transform_indices = @transform_4, window_bounds = array<i64: 2, 4, 1>}, {pipeline_mode = #tpu.pipeline_mode<synchronous>, transform_indices = @transform_5, window_bounds = array<i64: 8, 4>}, {pipeline_mode = #tpu.pipeline_mode<synchronous>, transform_indices = @transform_6, window_bounds = array<i64: 8, 1>}, {pipeline_mode = #tpu.pipeline_mode<synchronous>, transform_indices = @transform_7, window_bounds = array<i64: 2, 4, 4>}, {pipeline_mode = #tpu.pipeline_mode<synchronous>, transform_indices = @transform_8, window_bounds = array<i64: 4, 1>}, {transform_indices = @transform_9, window_bounds = array<i64: 2, 4, 8>}, {transform_indices = @transform_10, window_bounds = array<i64: 2, 8, 1>}]} {
    %cst = arith.constant 0.000000e+00 : f32
    %0 = vector.broadcast %cst : f32 to vector<4x128xf32>
    %c0 = arith.constant 0 : index
    %c0_0 = arith.constant 0 : index
    %1 = vector.load %arg12[%c0, %c0_0] : memref<4x144xf32, #tpu.memory_space<vmem>>, vector<4x128xf32>
    tpu.vector_store %arg12[%c0, %c0_0], %0 {strides = array<i32>} : memref<4x144xf32, #tpu.memory_space<vmem>>, vector<4x128xf32>,
    %2 = tpu.iota {dimensions = array<i32: 0>} : vector<16x8xi32>
    %3 = tpu.iota {dimensions = array<i32: 1>} : vector<16x8xi32>
    %c2_i32 = arith.constant 2 : i32
    %4 = vector.broadcast %c2_i32 : i32 to vector<16x8xi32>
    %5 = arith.muli %4, %3 : vector<16x8xi32>
    %6 = arith.cmpi eq, %2, %5 : vector<16x8xi32>
    %7 = arith.extui %6 : vector<16x8xi1> to vector<16x8xi32>
    %8 = arith.sitofp %7 : vector<16x8xi32> to vector<16x8xf32>
    %c0_1 = arith.constant 0 : index
    %c0_2 = arith.constant 0 : index
    %c0_3 = arith.constant 0 : index
    %9 = vector.load %arg1[%c0_1, %c0_2, %c0_3] : memref<2x4x16xf32, #tpu.memory_space<vmem>>, vector<1x4x16xf32>
    %10 = vector.shape_cast %9 : vector<1x4x16xf32> to vector<4x16xf32>
    %c0_4 = arith.constant 0 : index
    %c128 = arith.constant 128 : index
    %11 = vector.load %arg12[%c0_4, %c128] : memref<4x144xf32, #tpu.memory_space<vmem>>, vector<4x16xf32>
    tpu.vector_store %arg12[%c0_4, %c128], %10 {strides = array<i32>} : memref<4x144xf32, #tpu.memory_space<vmem>>, vector<4x16xf32>,
    %c0_5 = arith.constant 0 : index
    %c0_6 = arith.constant 0 : index
    %c0_7 = arith.constant 0 : index
    %12 = vector.load %arg3[%c0_5, %c0_6, %c0_7] : memref<2x16x1xf32, #tpu.memory_space<vmem>>, vector<1x16x1xf32>
    %13 = vector.shape_cast %12 : vector<1x16x1xf32> to vector<16x1xf32>
    %c0_8 = arith.constant 0 : index
    %c0_9 = arith.constant 0 : index
    %c0_10 = arith.constant 0 : index
    %c0_11 = arith.constant 0 : index
    %14 = vector.load %arg2[%c0_8, %c0_9, %c0_10, %c0_11] : memref<2x3x16x4xbf16, #tpu.memory_space<vmem>>, vector<1x1x16x4xbf16>
    %15 = vector.shape_cast %14 : vector<1x1x16x4xbf16> to vector<16x4xbf16>
    %16 = arith.truncf %10 : vector<4x16xf32> to vector<4x16xbf16>
    %cst_12 = arith.constant dense<0.000000e+00> : vector<16x16xf32>
    %17 = tpu.matmul %15, %16, %cst_12 {dimension_numbers = #tpu.dot_dimension_numbers<[1], [0], [0], [1], [0, 0, 1, 1], [], []>} : vector<16x4xbf16>, vector<4x16xbf16>, vector<16x16xf32> -> vector<16x16xf32>
    %18 = vector.broadcast %13 : vector<16x1xf32> to vector<16x16xf32>
    %19 = arith.addf %18, %17 : vector<16x16xf32>
    %c0_13 = arith.constant 0 : index
    %c1 = arith.constant 1 : index
    %c0_14 = arith.constant 0 : index
    %c0_15 = arith.constant 0 : index
    %20 = vector.load %arg2[%c0_13, %c1, %c0_14, %c0_15] : memref<2x3x16x4xbf16, #tpu.memory_space<vmem>>, vector<1x1x16x4xbf16>
    %21 = vector.shape_cast %20 : vector<1x1x16x4xbf16> to vector<16x4xbf16>
    %c0_16 = arith.constant 0 : index
    %c127 = arith.constant 127 : index
    %22 = vector.load %arg12[%c0_16, %c127] : memref<4x144xf32, #tpu.memory_space<vmem>>, vector<4x16xf32>
    %23 = arith.truncf %22 : vector<4x16xf32> to vector<4x16xbf16>
    %cst_17 = arith.constant dense<0.000000e+00> : vector<16x16xf32>
    %24 = tpu.matmul %21, %23, %cst_17 {dimension_numbers = #tpu.dot_dimension_numbers<[1], [0], [0], [1], [0, 0, 1, 1], [], []>} : vector<16x4xbf16>, vector<4x16xbf16>, vector<16x16xf32> -> vector<16x16xf32>
    %25 = arith.addf %19, %24 : vector<16x16xf32>
    %c0_18 = arith.constant 0 : index
    %c2 = arith.constant 2 : index
    %c0_19 = arith.constant 0 : index
    %c0_20 = arith.constant 0 : index
    %26 = vector.load %arg2[%c0_18, %c2, %c0_19, %c0_20] : memref<2x3x16x4xbf16, #tpu.memory_space<vmem>>, vector<1x1x16x4xbf16>
    %27 = vector.shape_cast %26 : vector<1x1x16x4xbf16> to vector<16x4xbf16>
    %c0_21 = arith.constant 0 : index
    %c126 = arith.constant 126 : index
    %28 = vector.load %arg12[%c0_21, %c126] : memref<4x144xf32, #tpu.memory_space<vmem>>, vector<4x16xf32>
    %29 = arith.truncf %28 : vector<4x16xf32> to vector<4x16xbf16>
    %cst_22 = arith.constant dense<0.000000e+00> : vector<16x16xf32>
    %30 = tpu.matmul %27, %29, %cst_22 {dimension_numbers = #tpu.dot_dimension_numbers<[1], [0], [0], [1], [0, 0, 1, 1], [], []>} : vector<16x4xbf16>, vector<4x16xbf16>, vector<16x16xf32> -> vector<16x16xf32>
    %31 = arith.addf %25, %30 : vector<16x16xf32>
    %32 = vector.extract_strided_slice %31 {offsets = [0, 0], sizes = [8, 16], strides = [1, 1]} : vector<16x16xf32> to vector<8x16xf32>
    %cst_23 = arith.constant 0.000000e+00 : f32
    %33 = vector.broadcast %cst_23 : f32 to vector<8x16xf32>
    %34 = arith.maximumf %32, %33 : vector<8x16xf32>
    %35 = vector.extract_strided_slice %31 {offsets = [8, 0], sizes = [8, 16], strides = [1, 1]} : vector<16x16xf32> to vector<8x16xf32>
    %36 = arith.negf %35 : vector<8x16xf32>
    %37 = math.exp %36 : vector<8x16xf32>
    %cst_24 = arith.constant 1.000000e+00 : f32
    %38 = vector.broadcast %cst_24 : f32 to vector<8x16xf32>
    %39 = arith.addf %38, %37 : vector<8x16xf32>
    %40 = arith.divf %38, %39 : vector<8x16xf32>
    %41 = arith.mulf %34, %40 : vector<8x16xf32>
    %c0_25 = arith.constant 0 : index
    %c0_26 = arith.constant 0 : index
    %c0_27 = arith.constant 0 : index
    %42 = vector.load %arg5[%c0_25, %c0_26, %c0_27] : memref<2x4x1xf32, #tpu.memory_space<vmem>>, vector<1x4x1xf32>
    %43 = vector.shape_cast %42 : vector<1x4x1xf32> to vector<4x1xf32>
    %44 = vector.broadcast %43 : vector<4x1xf32> to vector<4x16xf32>
    %45 = arith.addf %10, %44 : vector<4x16xf32>
    %c0_28 = arith.constant 0 : index
    %c0_29 = arith.constant 0 : index
    %c0_30 = arith.constant 0 : index
    %46 = vector.load %arg4[%c0_28, %c0_29, %c0_30] : memref<2x4x8xbf16, #tpu.memory_space<vmem>>, vector<1x4x8xbf16>
    %47 = vector.shape_cast %46 : vector<1x4x8xbf16> to vector<4x8xbf16>
    %48 = arith.truncf %41 : vector<8x16xf32> to vector<8x16xbf16>
    %cst_31 = arith.constant dense<0.000000e+00> : vector<4x16xf32>
    %49 = tpu.matmul %47, %48, %cst_31 {dimension_numbers = #tpu.dot_dimension_numbers<[1], [0], [0], [1], [0, 0, 1, 1], [], []>} : vector<4x8xbf16>, vector<8x16xbf16>, vector<4x16xf32> -> vector<4x16xf32>
    %50 = arith.addf %45, %49 : vector<4x16xf32>
    %c0_32 = arith.constant 0 : index
    %c128_33 = arith.constant 128 : index
    %51 = vector.load %arg12[%c0_32, %c128_33] : memref<4x144xf32, #tpu.memory_space<vmem>>, vector<4x16xf32>
    tpu.vector_store %arg12[%c0_32, %c128_33], %50 {strides = array<i32>} : memref<4x144xf32, #tpu.memory_space<vmem>>, vector<4x16xf32>,
    %c1_34 = arith.constant 1 : index
    %c0_35 = arith.constant 0 : index
    %c0_36 = arith.constant 0 : index
    %52 = vector.load %arg3[%c1_34, %c0_35, %c0_36] : memref<2x16x1xf32, #tpu.memory_space<vmem>>, vector<1x16x1xf32>
    %53 = vector.shape_cast %52 : vector<1x16x1xf32> to vector<16x1xf32>
    %c1_37 = arith.constant 1 : index
    %c0_38 = arith.constant 0 : index
    %c0_39 = arith.constant 0 : index
    %c0_40 = arith.constant 0 : index
    %54 = vector.load %arg2[%c1_37, %c0_38, %c0_39, %c0_40] : memref<2x3x16x4xbf16, #tpu.memory_space<vmem>>, vector<1x1x16x4xbf16>
    %55 = vector.shape_cast %54 : vector<1x1x16x4xbf16> to vector<16x4xbf16>
    %56 = arith.truncf %50 : vector<4x16xf32> to vector<4x16xbf16>
    %cst_41 = arith.constant dense<0.000000e+00> : vector<16x16xf32>
    %57 = tpu.matmul %55, %56, %cst_41 {dimension_numbers = #tpu.dot_dimension_numbers<[1], [0], [0], [1], [0, 0, 1, 1], [], []>} : vector<16x4xbf16>, vector<4x16xbf16>, vector<16x16xf32> -> vector<16x16xf32>
    %58 = vector.broadcast %53 : vector<16x1xf32> to vector<16x16xf32>
    %59 = arith.addf %58, %57 : vector<16x16xf32>
    %c1_42 = arith.constant 1 : index
    %c1_43 = arith.constant 1 : index
    %c0_44 = arith.constant 0 : index
    %c0_45 = arith.constant 0 : index
    %60 = vector.load %arg2[%c1_42, %c1_43, %c0_44, %c0_45] : memref<2x3x16x4xbf16, #tpu.memory_space<vmem>>, vector<1x1x16x4xbf16>
    %61 = vector.shape_cast %60 : vector<1x1x16x4xbf16> to vector<16x4xbf16>
    %c0_46 = arith.constant 0 : index
    %c127_47 = arith.constant 127 : index
    %62 = vector.load %arg12[%c0_46, %c127_47] : memref<4x144xf32, #tpu.memory_space<vmem>>, vector<4x16xf32>
    %63 = arith.truncf %62 : vector<4x16xf32> to vector<4x16xbf16>
    %cst_48 = arith.constant dense<0.000000e+00> : vector<16x16xf32>
    %64 = tpu.matmul %61, %63, %cst_48 {dimension_numbers = #tpu.dot_dimension_numbers<[1], [0], [0], [1], [0, 0, 1, 1], [], []>} : vector<16x4xbf16>, vector<4x16xbf16>, vector<16x16xf32> -> vector<16x16xf32>
    %65 = arith.addf %59, %64 : vector<16x16xf32>
    %c1_49 = arith.constant 1 : index
    %c2_50 = arith.constant 2 : index
    %c0_51 = arith.constant 0 : index
    %c0_52 = arith.constant 0 : index
    %66 = vector.load %arg2[%c1_49, %c2_50, %c0_51, %c0_52] : memref<2x3x16x4xbf16, #tpu.memory_space<vmem>>, vector<1x1x16x4xbf16>
    %67 = vector.shape_cast %66 : vector<1x1x16x4xbf16> to vector<16x4xbf16>
    %c0_53 = arith.constant 0 : index
    %c126_54 = arith.constant 126 : index
    %68 = vector.load %arg12[%c0_53, %c126_54] : memref<4x144xf32, #tpu.memory_space<vmem>>, vector<4x16xf32>
    %69 = arith.truncf %68 : vector<4x16xf32> to vector<4x16xbf16>
    %cst_55 = arith.constant dense<0.000000e+00> : vector<16x16xf32>
    %70 = tpu.matmul %67, %69, %cst_55 {dimension_numbers = #tpu.dot_dimension_numbers<[1], [0], [0], [1], [0, 0, 1, 1], [], []>} : vector<16x4xbf16>, vector<4x16xbf16>, vector<16x16xf32> -> vector<16x16xf32>
    %71 = arith.addf %65, %70 : vector<16x16xf32>
    %72 = vector.extract_strided_slice %71 {offsets = [0, 0], sizes = [8, 16], strides = [1, 1]} : vector<16x16xf32> to vector<8x16xf32>
    %cst_56 = arith.constant 0.000000e+00 : f32
    %73 = vector.broadcast %cst_56 : f32 to vector<8x16xf32>
    %74 = arith.maximumf %72, %73 : vector<8x16xf32>
    %75 = vector.extract_strided_slice %71 {offsets = [8, 0], sizes = [8, 16], strides = [1, 1]} : vector<16x16xf32> to vector<8x16xf32>
    %76 = arith.negf %75 : vector<8x16xf32>
    %77 = math.exp %76 : vector<8x16xf32>
    %cst_57 = arith.constant 1.000000e+00 : f32
    %78 = vector.broadcast %cst_57 : f32 to vector<8x16xf32>
    %79 = arith.addf %78, %77 : vector<8x16xf32>
    %80 = arith.divf %78, %79 : vector<8x16xf32>
    %81 = arith.mulf %74, %80 : vector<8x16xf32>
    %c1_58 = arith.constant 1 : index
    %c0_59 = arith.constant 0 : index
    %c0_60 = arith.constant 0 : index
    %82 = vector.load %arg5[%c1_58, %c0_59, %c0_60] : memref<2x4x1xf32, #tpu.memory_space<vmem>>, vector<1x4x1xf32>
    %83 = vector.shape_cast %82 : vector<1x4x1xf32> to vector<4x1xf32>
    %84 = vector.broadcast %83 : vector<4x1xf32> to vector<4x16xf32>
    %85 = arith.addf %50, %84 : vector<4x16xf32>
    %c1_61 = arith.constant 1 : index
    %c0_62 = arith.constant 0 : index
    %c0_63 = arith.constant 0 : index
    %86 = vector.load %arg4[%c1_61, %c0_62, %c0_63] : memref<2x4x8xbf16, #tpu.memory_space<vmem>>, vector<1x4x8xbf16>
    %87 = vector.shape_cast %86 : vector<1x4x8xbf16> to vector<4x8xbf16>
    %88 = arith.truncf %81 : vector<8x16xf32> to vector<8x16xbf16>
    %cst_64 = arith.constant dense<0.000000e+00> : vector<4x16xf32>
    %89 = tpu.matmul %87, %88, %cst_64 {dimension_numbers = #tpu.dot_dimension_numbers<[1], [0], [0], [1], [0, 0, 1, 1], [], []>} : vector<4x8xbf16>, vector<8x16xbf16>, vector<4x16xf32> -> vector<4x16xf32>
    %90 = arith.addf %85, %89 : vector<4x16xf32>
    %c0_65 = arith.constant 0 : index
    %c0_66 = arith.constant 0 : index
    %91 = vector.load %arg7[%c0_65, %c0_66] : memref<8x1xf32, #tpu.memory_space<vmem>>, vector<8x1xf32>
    %c0_67 = arith.constant 0 : index
    %c0_68 = arith.constant 0 : index
    %92 = vector.load %arg6[%c0_67, %c0_68] : memref<8x4xbf16, #tpu.memory_space<vmem>>, vector<8x4xbf16>
    %93 = vector.extract_strided_slice %90 {offsets = [0, 15], sizes = [4, 1], strides = [1, 1]} : vector<4x16xf32> to vector<4x1xf32>
    %94 = arith.truncf %93 : vector<4x1xf32> to vector<4x1xbf16>
    %cst_69 = arith.constant dense<0.000000e+00> : vector<8x1xf32>
    %95 = tpu.matmul %92, %94, %cst_69 {dimension_numbers = #tpu.dot_dimension_numbers<[1], [0], [0], [1], [0, 0, 1, 1], [], []>} : vector<8x4xbf16>, vector<4x1xbf16>, vector<8x1xf32> -> vector<8x1xf32>
    %96 = arith.addf %91, %95 : vector<8x1xf32>
    %c0_70 = arith.constant 0 : index
    %c0_71 = arith.constant 0 : index
    %c0_72 = arith.constant 0 : index
    %97 = vector.load %arg11[%c0_70, %c0_71, %c0_72] : memref<2x8x1xf32, #tpu.memory_space<vmem>>, vector<1x8x1xf32>
    %98 = vector.shape_cast %97 : vector<1x8x1xf32> to vector<8x1xf32>
    %99 = vector.shape_cast %96 : vector<8x1xf32> to vector<1x8x1xf32>
    tpu.vector_store %arg11[%c0_70, %c0_71, %c0_72], %99 {strides = array<i32>} : memref<2x8x1xf32, #tpu.memory_space<vmem>>, vector<1x8x1xf32>,
    %c0_73 = arith.constant 0 : index
    %c128_74 = arith.constant 128 : index
    %100 = vector.load %arg12[%c0_73, %c128_74] : memref<4x144xf32, #tpu.memory_space<vmem>>, vector<4x16xf32>
    tpu.vector_store %arg12[%c0_73, %c128_74], %90 {strides = array<i32>} : memref<4x144xf32, #tpu.memory_space<vmem>>, vector<4x16xf32>,
    %c0_75 = arith.constant 0 : index
    %c0_76 = arith.constant 0 : index
    %101 = vector.load %arg9[%c0_75, %c0_76] : memref<4x1xf32, #tpu.memory_space<vmem>>, vector<4x1xf32>
    %c1_77 = arith.constant 1 : index
    %c0_78 = arith.constant 0 : index
    %c0_79 = arith.constant 0 : index
    %102 = vector.load %arg8[%c1_77, %c0_78, %c0_79] : memref<2x4x4xbf16, #tpu.memory_space<vmem>>, vector<1x4x4xbf16>
    %103 = vector.shape_cast %102 : vector<1x4x4xbf16> to vector<4x4xbf16>
    %104 = arith.truncf %90 : vector<4x16xf32> to vector<4x16xbf16>
    %cst_80 = arith.constant dense<0.000000e+00> : vector<4x16xf32>
    %105 = tpu.matmul %103, %104, %cst_80 {dimension_numbers = #tpu.dot_dimension_numbers<[1], [0], [0], [1], [0, 0, 1, 1], [], []>} : vector<4x4xbf16>, vector<4x16xbf16>, vector<4x16xf32> -> vector<4x16xf32>
    %106 = vector.broadcast %101 : vector<4x1xf32> to vector<4x16xf32>
    %107 = arith.addf %106, %105 : vector<4x16xf32>
    %c0_81 = arith.constant 0 : index
    %c0_82 = arith.constant 0 : index
    %c0_83 = arith.constant 0 : index
    %108 = vector.load %arg8[%c0_81, %c0_82, %c0_83] : memref<2x4x4xbf16, #tpu.memory_space<vmem>>, vector<1x4x4xbf16>
    %109 = vector.shape_cast %108 : vector<1x4x4xbf16> to vector<4x4xbf16>
    %c0_84 = arith.constant 0 : index
    %c127_85 = arith.constant 127 : index
    %110 = vector.load %arg12[%c0_84, %c127_85] : memref<4x144xf32, #tpu.memory_space<vmem>>, vector<4x16xf32>
    %111 = arith.truncf %110 : vector<4x16xf32> to vector<4x16xbf16>
    %cst_86 = arith.constant dense<0.000000e+00> : vector<4x16xf32>
    %112 = tpu.matmul %109, %111, %cst_86 {dimension_numbers = #tpu.dot_dimension_numbers<[1], [0], [0], [1], [0, 0, 1, 1], [], []>} : vector<4x4xbf16>, vector<4x16xbf16>, vector<4x16xf32> -> vector<4x16xf32>
    %113 = arith.addf %107, %112 : vector<4x16xf32>
    %cst_87 = arith.constant dense<0.000000e+00> : vector<4x8xf32>
    %114 = tpu.matmul %113, %8, %cst_87 {dimension_numbers = #tpu.dot_dimension_numbers<[1], [0], [0], [1], [0, 0, 1, 1], [], []>} : vector<4x16xf32>, vector<16x8xf32>, vector<4x8xf32> -> vector<4x8xf32>
    %c0_88 = arith.constant 0 : index
    %c0_89 = arith.constant 0 : index
    %c0_90 = arith.constant 0 : index
    %115 = vector.load %arg10[%c0_88, %c0_89, %c0_90] : memref<2x4x8xf32, #tpu.memory_space<vmem>>, vector<1x4x8xf32>
    %116 = vector.shape_cast %115 : vector<1x4x8xf32> to vector<4x8xf32>
    %117 = vector.shape_cast %114 : vector<4x8xf32> to vector<1x4x8xf32>
    tpu.vector_store %arg10[%c0_88, %c0_89, %c0_90], %117 {strides = array<i32>} : memref<2x4x8xf32, #tpu.memory_space<vmem>>, vector<1x4x8xf32>,
    %c1_91 = arith.constant 1 : index
    %c0_92 = arith.constant 0 : index
    %c0_93 = arith.constant 0 : index
    %118 = vector.load %arg1[%c1_91, %c0_92, %c0_93] : memref<2x4x16xf32, #tpu.memory_space<vmem>>, vector<1x4x16xf32>
    %119 = vector.shape_cast %118 : vector<1x4x16xf32> to vector<4x16xf32>
    %c0_94 = arith.constant 0 : index
    %c128_95 = arith.constant 128 : index
    %120 = vector.load %arg12[%c0_94, %c128_95] : memref<4x144xf32, #tpu.memory_space<vmem>>, vector<4x16xf32>
    tpu.vector_store %arg12[%c0_94, %c128_95], %119 {strides = array<i32>} : memref<4x144xf32, #tpu.memory_space<vmem>>, vector<4x16xf32>,
    %c0_96 = arith.constant 0 : index
    %c0_97 = arith.constant 0 : index
    %c0_98 = arith.constant 0 : index
    %121 = vector.load %arg3[%c0_96, %c0_97, %c0_98] : memref<2x16x1xf32, #tpu.memory_space<vmem>>, vector<1x16x1xf32>
    %122 = vector.shape_cast %121 : vector<1x16x1xf32> to vector<16x1xf32>
    %c0_99 = arith.constant 0 : index
    %c0_100 = arith.constant 0 : index
    %c0_101 = arith.constant 0 : index
    %c0_102 = arith.constant 0 : index
    %123 = vector.load %arg2[%c0_99, %c0_100, %c0_101, %c0_102] : memref<2x3x16x4xbf16, #tpu.memory_space<vmem>>, vector<1x1x16x4xbf16>
    %124 = vector.shape_cast %123 : vector<1x1x16x4xbf16> to vector<16x4xbf16>
    %125 = arith.truncf %119 : vector<4x16xf32> to vector<4x16xbf16>
    %cst_103 = arith.constant dense<0.000000e+00> : vector<16x16xf32>
    %126 = tpu.matmul %124, %125, %cst_103 {dimension_numbers = #tpu.dot_dimension_numbers<[1], [0], [0], [1], [0, 0, 1, 1], [], []>} : vector<16x4xbf16>, vector<4x16xbf16>, vector<16x16xf32> -> vector<16x16xf32>
    %127 = vector.broadcast %122 : vector<16x1xf32> to vector<16x16xf32>
    %128 = arith.addf %127, %126 : vector<16x16xf32>
    %c0_104 = arith.constant 0 : index
    %c1_105 = arith.constant 1 : index
    %c0_106 = arith.constant 0 : index
    %c0_107 = arith.constant 0 : index
    %129 = vector.load %arg2[%c0_104, %c1_105, %c0_106, %c0_107] : memref<2x3x16x4xbf16, #tpu.memory_space<vmem>>, vector<1x1x16x4xbf16>
    %130 = vector.shape_cast %129 : vector<1x1x16x4xbf16> to vector<16x4xbf16>
    %c0_108 = arith.constant 0 : index
    %c127_109 = arith.constant 127 : index
    %131 = vector.load %arg12[%c0_108, %c127_109] : memref<4x144xf32, #tpu.memory_space<vmem>>, vector<4x16xf32>
    %132 = arith.truncf %131 : vector<4x16xf32> to vector<4x16xbf16>
    %cst_110 = arith.constant dense<0.000000e+00> : vector<16x16xf32>
    %133 = tpu.matmul %130, %132, %cst_110 {dimension_numbers = #tpu.dot_dimension_numbers<[1], [0], [0], [1], [0, 0, 1, 1], [], []>} : vector<16x4xbf16>, vector<4x16xbf16>, vector<16x16xf32> -> vector<16x16xf32>
    %134 = arith.addf %128, %133 : vector<16x16xf32>
    %c0_111 = arith.constant 0 : index
    %c2_112 = arith.constant 2 : index
    %c0_113 = arith.constant 0 : index
    %c0_114 = arith.constant 0 : index
    %135 = vector.load %arg2[%c0_111, %c2_112, %c0_113, %c0_114] : memref<2x3x16x4xbf16, #tpu.memory_space<vmem>>, vector<1x1x16x4xbf16>
    %136 = vector.shape_cast %135 : vector<1x1x16x4xbf16> to vector<16x4xbf16>
    %c0_115 = arith.constant 0 : index
    %c126_116 = arith.constant 126 : index
    %137 = vector.load %arg12[%c0_115, %c126_116] : memref<4x144xf32, #tpu.memory_space<vmem>>, vector<4x16xf32>
    %138 = arith.truncf %137 : vector<4x16xf32> to vector<4x16xbf16>
    %cst_117 = arith.constant dense<0.000000e+00> : vector<16x16xf32>
    %139 = tpu.matmul %136, %138, %cst_117 {dimension_numbers = #tpu.dot_dimension_numbers<[1], [0], [0], [1], [0, 0, 1, 1], [], []>} : vector<16x4xbf16>, vector<4x16xbf16>, vector<16x16xf32> -> vector<16x16xf32>
    %140 = arith.addf %134, %139 : vector<16x16xf32>
    %141 = vector.extract_strided_slice %140 {offsets = [0, 0], sizes = [8, 16], strides = [1, 1]} : vector<16x16xf32> to vector<8x16xf32>
    %cst_118 = arith.constant 0.000000e+00 : f32
    %142 = vector.broadcast %cst_118 : f32 to vector<8x16xf32>
    %143 = arith.maximumf %141, %142 : vector<8x16xf32>
    %144 = vector.extract_strided_slice %140 {offsets = [8, 0], sizes = [8, 16], strides = [1, 1]} : vector<16x16xf32> to vector<8x16xf32>
    %145 = arith.negf %144 : vector<8x16xf32>
    %146 = math.exp %145 : vector<8x16xf32>
    %cst_119 = arith.constant 1.000000e+00 : f32
    %147 = vector.broadcast %cst_119 : f32 to vector<8x16xf32>
    %148 = arith.addf %147, %146 : vector<8x16xf32>
    %149 = arith.divf %147, %148 : vector<8x16xf32>
    %150 = arith.mulf %143, %149 : vector<8x16xf32>
    %c0_120 = arith.constant 0 : index
    %c0_121 = arith.constant 0 : index
    %c0_122 = arith.constant 0 : index
    %151 = vector.load %arg5[%c0_120, %c0_121, %c0_122] : memref<2x4x1xf32, #tpu.memory_space<vmem>>, vector<1x4x1xf32>
    %152 = vector.shape_cast %151 : vector<1x4x1xf32> to vector<4x1xf32>
    %153 = vector.broadcast %152 : vector<4x1xf32> to vector<4x16xf32>
    %154 = arith.addf %119, %153 : vector<4x16xf32>
    %c0_123 = arith.constant 0 : index
    %c0_124 = arith.constant 0 : index
    %c0_125 = arith.constant 0 : index
    %155 = vector.load %arg4[%c0_123, %c0_124, %c0_125] : memref<2x4x8xbf16, #tpu.memory_space<vmem>>, vector<1x4x8xbf16>
    %156 = vector.shape_cast %155 : vector<1x4x8xbf16> to vector<4x8xbf16>
    %157 = arith.truncf %150 : vector<8x16xf32> to vector<8x16xbf16>
    %cst_126 = arith.constant dense<0.000000e+00> : vector<4x16xf32>
    %158 = tpu.matmul %156, %157, %cst_126 {dimension_numbers = #tpu.dot_dimension_numbers<[1], [0], [0], [1], [0, 0, 1, 1], [], []>} : vector<4x8xbf16>, vector<8x16xbf16>, vector<4x16xf32> -> vector<4x16xf32>
    %159 = arith.addf %154, %158 : vector<4x16xf32>
    %c0_127 = arith.constant 0 : index
    %c128_128 = arith.constant 128 : index
    %160 = vector.load %arg12[%c0_127, %c128_128] : memref<4x144xf32, #tpu.memory_space<vmem>>, vector<4x16xf32>
    tpu.vector_store %arg12[%c0_127, %c128_128], %159 {strides = array<i32>} : memref<4x144xf32, #tpu.memory_space<vmem>>, vector<4x16xf32>,
    %c1_129 = arith.constant 1 : index
    %c0_130 = arith.constant 0 : index
    %c0_131 = arith.constant 0 : index
    %161 = vector.load %arg3[%c1_129, %c0_130, %c0_131] : memref<2x16x1xf32, #tpu.memory_space<vmem>>, vector<1x16x1xf32>
    %162 = vector.shape_cast %161 : vector<1x16x1xf32> to vector<16x1xf32>
    %c1_132 = arith.constant 1 : index
    %c0_133 = arith.constant 0 : index
    %c0_134 = arith.constant 0 : index
    %c0_135 = arith.constant 0 : index
    %163 = vector.load %arg2[%c1_132, %c0_133, %c0_134, %c0_135] : memref<2x3x16x4xbf16, #tpu.memory_space<vmem>>, vector<1x1x16x4xbf16>
    %164 = vector.shape_cast %163 : vector<1x1x16x4xbf16> to vector<16x4xbf16>
    %165 = arith.truncf %159 : vector<4x16xf32> to vector<4x16xbf16>
    %cst_136 = arith.constant dense<0.000000e+00> : vector<16x16xf32>
    %166 = tpu.matmul %164, %165, %cst_136 {dimension_numbers = #tpu.dot_dimension_numbers<[1], [0], [0], [1], [0, 0, 1, 1], [], []>} : vector<16x4xbf16>, vector<4x16xbf16>, vector<16x16xf32> -> vector<16x16xf32>
    %167 = vector.broadcast %162 : vector<16x1xf32> to vector<16x16xf32>
    %168 = arith.addf %167, %166 : vector<16x16xf32>
    %c1_137 = arith.constant 1 : index
    %c1_138 = arith.constant 1 : index
    %c0_139 = arith.constant 0 : index
    %c0_140 = arith.constant 0 : index
    %169 = vector.load %arg2[%c1_137, %c1_138, %c0_139, %c0_140] : memref<2x3x16x4xbf16, #tpu.memory_space<vmem>>, vector<1x1x16x4xbf16>
    %170 = vector.shape_cast %169 : vector<1x1x16x4xbf16> to vector<16x4xbf16>
    %c0_141 = arith.constant 0 : index
    %c127_142 = arith.constant 127 : index
    %171 = vector.load %arg12[%c0_141, %c127_142] : memref<4x144xf32, #tpu.memory_space<vmem>>, vector<4x16xf32>
    %172 = arith.truncf %171 : vector<4x16xf32> to vector<4x16xbf16>
    %cst_143 = arith.constant dense<0.000000e+00> : vector<16x16xf32>
    %173 = tpu.matmul %170, %172, %cst_143 {dimension_numbers = #tpu.dot_dimension_numbers<[1], [0], [0], [1], [0, 0, 1, 1], [], []>} : vector<16x4xbf16>, vector<4x16xbf16>, vector<16x16xf32> -> vector<16x16xf32>
    %174 = arith.addf %168, %173 : vector<16x16xf32>
    %c1_144 = arith.constant 1 : index
    %c2_145 = arith.constant 2 : index
    %c0_146 = arith.constant 0 : index
    %c0_147 = arith.constant 0 : index
    %175 = vector.load %arg2[%c1_144, %c2_145, %c0_146, %c0_147] : memref<2x3x16x4xbf16, #tpu.memory_space<vmem>>, vector<1x1x16x4xbf16>
    %176 = vector.shape_cast %175 : vector<1x1x16x4xbf16> to vector<16x4xbf16>
    %c0_148 = arith.constant 0 : index
    %c126_149 = arith.constant 126 : index
    %177 = vector.load %arg12[%c0_148, %c126_149] : memref<4x144xf32, #tpu.memory_space<vmem>>, vector<4x16xf32>
    %178 = arith.truncf %177 : vector<4x16xf32> to vector<4x16xbf16>
    %cst_150 = arith.constant dense<0.000000e+00> : vector<16x16xf32>
    %179 = tpu.matmul %176, %178, %cst_150 {dimension_numbers = #tpu.dot_dimension_numbers<[1], [0], [0], [1], [0, 0, 1, 1], [], []>} : vector<16x4xbf16>, vector<4x16xbf16>, vector<16x16xf32> -> vector<16x16xf32>
    %180 = arith.addf %174, %179 : vector<16x16xf32>
    %181 = vector.extract_strided_slice %180 {offsets = [0, 0], sizes = [8, 16], strides = [1, 1]} : vector<16x16xf32> to vector<8x16xf32>
    %cst_151 = arith.constant 0.000000e+00 : f32
    %182 = vector.broadcast %cst_151 : f32 to vector<8x16xf32>
    %183 = arith.maximumf %181, %182 : vector<8x16xf32>
    %184 = vector.extract_strided_slice %180 {offsets = [8, 0], sizes = [8, 16], strides = [1, 1]} : vector<16x16xf32> to vector<8x16xf32>
    %185 = arith.negf %184 : vector<8x16xf32>
    %186 = math.exp %185 : vector<8x16xf32>
    %cst_152 = arith.constant 1.000000e+00 : f32
    %187 = vector.broadcast %cst_152 : f32 to vector<8x16xf32>
    %188 = arith.addf %187, %186 : vector<8x16xf32>
    %189 = arith.divf %187, %188 : vector<8x16xf32>
    %190 = arith.mulf %183, %189 : vector<8x16xf32>
    %c1_153 = arith.constant 1 : index
    %c0_154 = arith.constant 0 : index
    %c0_155 = arith.constant 0 : index
    %191 = vector.load %arg5[%c1_153, %c0_154, %c0_155] : memref<2x4x1xf32, #tpu.memory_space<vmem>>, vector<1x4x1xf32>
    %192 = vector.shape_cast %191 : vector<1x4x1xf32> to vector<4x1xf32>
    %193 = vector.broadcast %192 : vector<4x1xf32> to vector<4x16xf32>
    %194 = arith.addf %159, %193 : vector<4x16xf32>
    %c1_156 = arith.constant 1 : index
    %c0_157 = arith.constant 0 : index
    %c0_158 = arith.constant 0 : index
    %195 = vector.load %arg4[%c1_156, %c0_157, %c0_158] : memref<2x4x8xbf16, #tpu.memory_space<vmem>>, vector<1x4x8xbf16>
    %196 = vector.shape_cast %195 : vector<1x4x8xbf16> to vector<4x8xbf16>
    %197 = arith.truncf %190 : vector<8x16xf32> to vector<8x16xbf16>
    %cst_159 = arith.constant dense<0.000000e+00> : vector<4x16xf32>
    %198 = tpu.matmul %196, %197, %cst_159 {dimension_numbers = #tpu.dot_dimension_numbers<[1], [0], [0], [1], [0, 0, 1, 1], [], []>} : vector<4x8xbf16>, vector<8x16xbf16>, vector<4x16xf32> -> vector<4x16xf32>
    %199 = arith.addf %194, %198 : vector<4x16xf32>
    %c0_160 = arith.constant 0 : index
    %c0_161 = arith.constant 0 : index
    %200 = vector.load %arg7[%c0_160, %c0_161] : memref<8x1xf32, #tpu.memory_space<vmem>>, vector<8x1xf32>
    %c0_162 = arith.constant 0 : index
    %c0_163 = arith.constant 0 : index
    %201 = vector.load %arg6[%c0_162, %c0_163] : memref<8x4xbf16, #tpu.memory_space<vmem>>, vector<8x4xbf16>
    %202 = vector.extract_strided_slice %199 {offsets = [0, 15], sizes = [4, 1], strides = [1, 1]} : vector<4x16xf32> to vector<4x1xf32>
    %203 = arith.truncf %202 : vector<4x1xf32> to vector<4x1xbf16>
    %cst_164 = arith.constant dense<0.000000e+00> : vector<8x1xf32>
    %204 = tpu.matmul %201, %203, %cst_164 {dimension_numbers = #tpu.dot_dimension_numbers<[1], [0], [0], [1], [0, 0, 1, 1], [], []>} : vector<8x4xbf16>, vector<4x1xbf16>, vector<8x1xf32> -> vector<8x1xf32>
    %205 = arith.addf %200, %204 : vector<8x1xf32>
    %c1_165 = arith.constant 1 : index
    %c0_166 = arith.constant 0 : index
    %c0_167 = arith.constant 0 : index
    %206 = vector.load %arg11[%c1_165, %c0_166, %c0_167] : memref<2x8x1xf32, #tpu.memory_space<vmem>>, vector<1x8x1xf32>
    %207 = vector.shape_cast %206 : vector<1x8x1xf32> to vector<8x1xf32>
    %208 = vector.shape_cast %205 : vector<8x1xf32> to vector<1x8x1xf32>
    tpu.vector_store %arg11[%c1_165, %c0_166, %c0_167], %208 {strides = array<i32>} : memref<2x8x1xf32, #tpu.memory_space<vmem>>, vector<1x8x1xf32>,
    %c0_168 = arith.constant 0 : index
    %c128_169 = arith.constant 128 : index
    %209 = vector.load %arg12[%c0_168, %c128_169] : memref<4x144xf32, #tpu.memory_space<vmem>>, vector<4x16xf32>
    tpu.vector_store %arg12[%c0_168, %c128_169], %199 {strides = array<i32>} : memref<4x144xf32, #tpu.memory_space<vmem>>, vector<4x16xf32>,
    %c0_170 = arith.constant 0 : index
    %c0_171 = arith.constant 0 : index
    %210 = vector.load %arg9[%c0_170, %c0_171] : memref<4x1xf32, #tpu.memory_space<vmem>>, vector<4x1xf32>
    %c1_172 = arith.constant 1 : index
    %c0_173 = arith.constant 0 : index
    %c0_174 = arith.constant 0 : index
    %211 = vector.load %arg8[%c1_172, %c0_173, %c0_174] : memref<2x4x4xbf16, #tpu.memory_space<vmem>>, vector<1x4x4xbf16>
    %212 = vector.shape_cast %211 : vector<1x4x4xbf16> to vector<4x4xbf16>
    %213 = arith.truncf %199 : vector<4x16xf32> to vector<4x16xbf16>
    %cst_175 = arith.constant dense<0.000000e+00> : vector<4x16xf32>
    %214 = tpu.matmul %212, %213, %cst_175 {dimension_numbers = #tpu.dot_dimension_numbers<[1], [0], [0], [1], [0, 0, 1, 1], [], []>} : vector<4x4xbf16>, vector<4x16xbf16>, vector<4x16xf32> -> vector<4x16xf32>
    %215 = vector.broadcast %210 : vector<4x1xf32> to vector<4x16xf32>
    %216 = arith.addf %215, %214 : vector<4x16xf32>
    %c0_176 = arith.constant 0 : index
    %c0_177 = arith.constant 0 : index
    %c0_178 = arith.constant 0 : index
    %217 = vector.load %arg8[%c0_176, %c0_177, %c0_178] : memref<2x4x4xbf16, #tpu.memory_space<vmem>>, vector<1x4x4xbf16>
    %218 = vector.shape_cast %217 : vector<1x4x4xbf16> to vector<4x4xbf16>
    %c0_179 = arith.constant 0 : index
    %c127_180 = arith.constant 127 : index
    %219 = vector.load %arg12[%c0_179, %c127_180] : memref<4x144xf32, #tpu.memory_space<vmem>>, vector<4x16xf32>
    %220 = arith.truncf %219 : vector<4x16xf32> to vector<4x16xbf16>
    %cst_181 = arith.constant dense<0.000000e+00> : vector<4x16xf32>
    %221 = tpu.matmul %218, %220, %cst_181 {dimension_numbers = #tpu.dot_dimension_numbers<[1], [0], [0], [1], [0, 0, 1, 1], [], []>} : vector<4x4xbf16>, vector<4x16xbf16>, vector<4x16xf32> -> vector<4x16xf32>
    %222 = arith.addf %216, %221 : vector<4x16xf32>
    %cst_182 = arith.constant dense<0.000000e+00> : vector<4x8xf32>
    %223 = tpu.matmul %222, %8, %cst_182 {dimension_numbers = #tpu.dot_dimension_numbers<[1], [0], [0], [1], [0, 0, 1, 1], [], []>} : vector<4x16xf32>, vector<16x8xf32>, vector<4x8xf32> -> vector<4x8xf32>
    %c1_183 = arith.constant 1 : index
    %c0_184 = arith.constant 0 : index
    %c0_185 = arith.constant 0 : index
    %224 = vector.load %arg10[%c1_183, %c0_184, %c0_185] : memref<2x4x8xf32, #tpu.memory_space<vmem>>, vector<1x4x8xf32>
    %225 = vector.shape_cast %224 : vector<1x4x8xf32> to vector<4x8xf32>
    %226 = vector.shape_cast %223 : vector<4x8xf32> to vector<1x4x8xf32>
    tpu.vector_store %arg10[%c1_183, %c0_184, %c0_185], %226 {strides = array<i32>} : memref<2x4x8xf32, #tpu.memory_space<vmem>>, vector<1x4x8xf32>,
    return
  }
  func.func @transform_0(%arg0: i32) -> (i32, i32, i32) {
    %c0_i32 = arith.constant 0 : i32
    %c0_i32_0 = arith.constant 0 : i32
    %c0_i32_1 = arith.constant 0 : i32
    return %arg0, %c0_i32, %c0_i32_0 : i32, i32, i32
  }
  func.func @transform_1(%arg0: i32) -> (i32, i32, i32, i32) {
    %c0_i32 = arith.constant 0 : i32
    %c0_i32_0 = arith.constant 0 : i32
    %c0_i32_1 = arith.constant 0 : i32
    %c0_i32_2 = arith.constant 0 : i32
    %c0_i32_3 = arith.constant 0 : i32
    return %c0_i32, %c0_i32_0, %c0_i32_1, %c0_i32_2 : i32, i32, i32, i32
  }
  func.func @transform_2(%arg0: i32) -> (i32, i32, i32) {
    %c0_i32 = arith.constant 0 : i32
    %c0_i32_0 = arith.constant 0 : i32
    %c0_i32_1 = arith.constant 0 : i32
    %c0_i32_2 = arith.constant 0 : i32
    return %c0_i32, %c0_i32_0, %c0_i32_1 : i32, i32, i32
  }
  func.func @transform_3(%arg0: i32) -> (i32, i32, i32) {
    %c0_i32 = arith.constant 0 : i32
    %c0_i32_0 = arith.constant 0 : i32
    %c0_i32_1 = arith.constant 0 : i32
    %c0_i32_2 = arith.constant 0 : i32
    return %c0_i32, %c0_i32_0, %c0_i32_1 : i32, i32, i32
  }
  func.func @transform_4(%arg0: i32) -> (i32, i32, i32) {
    %c0_i32 = arith.constant 0 : i32
    %c0_i32_0 = arith.constant 0 : i32
    %c0_i32_1 = arith.constant 0 : i32
    %c0_i32_2 = arith.constant 0 : i32
    return %c0_i32, %c0_i32_0, %c0_i32_1 : i32, i32, i32
  }
  func.func @transform_5(%arg0: i32) -> (i32, i32) {
    %c0_i32 = arith.constant 0 : i32
    %c0_i32_0 = arith.constant 0 : i32
    %c0_i32_1 = arith.constant 0 : i32
    return %c0_i32, %c0_i32_0 : i32, i32
  }
  func.func @transform_6(%arg0: i32) -> (i32, i32) {
    %c0_i32 = arith.constant 0 : i32
    %c0_i32_0 = arith.constant 0 : i32
    %c0_i32_1 = arith.constant 0 : i32
    return %c0_i32, %c0_i32_0 : i32, i32
  }
  func.func @transform_7(%arg0: i32) -> (i32, i32, i32) {
    %c0_i32 = arith.constant 0 : i32
    %c0_i32_0 = arith.constant 0 : i32
    %c0_i32_1 = arith.constant 0 : i32
    %c0_i32_2 = arith.constant 0 : i32
    return %c0_i32, %c0_i32_0, %c0_i32_1 : i32, i32, i32
  }
  func.func @transform_8(%arg0: i32) -> (i32, i32) {
    %c0_i32 = arith.constant 0 : i32
    %c0_i32_0 = arith.constant 0 : i32
    %c0_i32_1 = arith.constant 0 : i32
    return %c0_i32, %c0_i32_0 : i32, i32
  }
  func.func @transform_9(%arg0: i32) -> (i32, i32, i32) {
    %c0_i32 = arith.constant 0 : i32
    %c0_i32_0 = arith.constant 0 : i32
    %c0_i32_1 = arith.constant 0 : i32
    return %arg0, %c0_i32, %c0_i32_0 : i32, i32, i32
  }
  func.func @transform_10(%arg0: i32) -> (i32, i32, i32) {
    %c0_i32 = arith.constant 0 : i32
    %c0_i32_0 = arith.constant 0 : i32
    %c0_i32_1 = arith.constant 0 : i32
    return %arg0, %c0_i32, %c0_i32_0 : i32, i32, i32
  }
}

</mosaic_0001>

<bundles_post_ra>
// kernel: tpu_custom_call.1
= control target key start
LH: loop header
LB: loop body
LE: loop exit
PB: predicated region body
PF: predicated region fallthrough
CT: control target
= control target key end

     0   :  { %vm50_vm0 = vcmask 125952   ;;  %v1239_v1 = vmov 0.0   ;;  %s1569_s0 = inlined_call_operand.vmem [shape: f32[2,4,16], index: 0, kind: input, shape index: {}]   ;;  %s1570_s1 = inlined_call_operand.vmem [shape: bf16[2,3,16,4], index: 1, kind: input, shape index: {}]   ;;  %s1571_s2 = inlined_call_operand.vmem [shape: f32[2,16,1], index: 2, kind: input, shape index: {}]   ;;  %s1572_s3 = inlined_call_operand.vmem [shape: bf16[2,4,8], index: 3, kind: input, shape index: {}]   ;;  %s1573_s4 = inlined_call_operand.vmem [shape: f32[2,4,1], index: 4, kind: input, shape index: {}]   ;;  %s1574_s5 = inlined_call_operand.vmem [shape: bf16[8,4], index: 5, kind: input, shape index: {}]   ;;  %s1575_s6 = inlined_call_operand.vmem [shape: f32[8,1], index: 6, kind: input, shape index: {}]   ;;  %s1576_s7 = inlined_call_operand.vmem [shape: bf16[2,4,4], index: 7, kind: input, shape index: {}]   ;;  %s1577_s8 = inlined_call_operand.vmem [shape: f32[4,1], index: 8, kind: input, shape index: {}]   ;;  %s1578_s9 = inlined_call_operand.hbm [shape: f32[2,4,8], index: 9, kind: output, shape index: {0}]   ;;  %s1579_s10 = inlined_call_operand.vmem [shape: f32[2,8,1], index: 10, kind: output, shape index: {1}]  }
   0x1   :  { %v1306_v0 = vld [vmem:[%s1569_s0] sm:$0xf]  ;;  %36 = vst [vmem:[#allocation2] sm:$0xf] %v1239_v1 }
   0x2   :  { %16 = vsyncpa [#allocation4], 0  ;;  %51 = vst.msk [vmem:[#allocation2 + $0x4] sm:$0xf] %vm50_vm0, %v1306_v0  ;;  %s1240_s15 = smov 1   ;;  %s1241_s16 = smov 2   ;;  %v56_v11 = vpack.c.bf16 %v1306_v0, %v1306_v0 }
   0x3   :  { %vm66_vm1 = vcmask 1041408   ;;  %v1173_v13 = vld [vmem:[%s1570_s1] sm:$0xff]  ;;  %vm62_vm2 = vcmask 31744   ;;  %v1324_v14 = vld [vmem:[%s1571_s2 + $0x8] sm:$0xff]  ;;  %v1242_v15 = vmov 0   ;;  %vm119_vm3 = vcmask 7168  }
   0x4   :  { %v68_v12 = vsel %vm66_vm1, %v56_v11, 0  ;;  %1194 = vset.pattern.permute.xlu2 %v1242_v15  ;;  %1195 = vset.pattern.permute.xlu0 %v1242_v15  ;;  %v1330_v16 = vld [vmem:[%s1571_s2] sm:$0xff]  ;;  %v1174_v22 = vld [vmem:[%s1570_s1 + $0x8] sm:$0xff]  ;;  %vm166_vm4 = vcmask 15360   ;;  %v1175_v26 = vld [vmem:[%s1570_s1 + $0x10] sm:$0xff]  ;;  %vm224_vm9 = vcmask 1043456  }
   0x5   :  { %77 = vmatpush.bf16.msra.mxu0 %v68_v12  ;;  %91 = vperm.xlu2 %1194, %v1324_v14   ;;  %v211_v38 = vld [vmem:[%s1573_s4] sm:$0xf]  ;;  %v1351_v41 = vld [vmem:[%s1571_s2 + $0x18] sm:$0xff]  ;;  %vm220_vm10 = vcmask 64512   ;;  %s1243_s26 = smov 113   ;;  %s1245_s23 = smov [#allocation3]  }
   0x6   :  { %1196 = vset.pattern.permute.xlu1 %v1242_v15  ;;  %v218_v60 = vld [vmem:[%s1572_s3] sm:$0x3]  ;;  %v1106_v15 = vld [vmem:[%s1573_s4 + $0x4] sm:$0xf]  ;;  %s1043_s27 = sshll.u32 %s1578_s9, 4  ;;  %s1246_s28 = smov 64   ;;  %s1044_s27 = int_to_ptr.hbm [resolvable:$true] %s1043_s27 }
   0x7   :  { %s1247_s29 = smov 4  }
   0x8   :  { %1065 = vmatmul.msk.bf16.vlgmr.msra.gmra.mxu0 %vm62_vm2, %v1173_v13 }
   0x9   :  { %v99_v2 = vld [vmem:[#allocation2] sm:$0xff] }
   0xa   :  { %101 = vst [vmem:[#allocation1] ss:$2 sm:$0xff] %v99_v2 }
   0xd   :  { %86 = vperm.xlu2 %1194, %v1330_v16  }
  0x11   :  { %v102_v3 = vld.sshfl [vmem:[#allocation1] sm:$0xff pattern:$0x75316420]  ;;  %v103_v4 = vld.sshfl [vmem:[#allocation1 + $0x8] sm:$0xff pattern:$0x75316420] }
  0x12   :  { %v106_v5 = vpack.c.bf16 %v102_v3, %v102_v3  ;;  %148 = vst [vmem:[#allocation1] ss:$2 sm:$0xff] %v99_v2  ;;  %v107_v6 = vpack.c.bf16 %v103_v4, %v103_v4  ;;  %v1176_v4 = vld [vmem:[%s1570_s1 + $0x18] sm:$0xff] }
  0x14   :  { %115 = vrot.lane.b32.xlu1 %v106_v5, %s1240_s15 }
  0x19   :  { %v149_v7 = vld.sshfl [vmem:[#allocation1] sm:$0xff pattern:$0x75316420]  ;;  %v150_v9 = vld.sshfl [vmem:[#allocation1 + $0x8] sm:$0xff pattern:$0x75316420] }
  0x1a   :  { %v153_v8 = vpack.c.bf16 %v149_v7, %v149_v7  ;;  %v154_v10 = vpack.c.bf16 %v150_v9, %v150_v9 }
  0x1c   :  { %162 = vrot.lane.b32.xlu0 %v153_v8, %s1241_s16  ;;  %117 = vrot.lane.b32.xlu1 %v107_v6, %s1240_s15 }
  0x24   :  { %164 = vrot.lane.b32.xlu0 %v154_v10, %s1241_s16 }
  0x2c   :  { %214 = vperm.xlu0 %1195, %v211_v38  }
  0x34   :  { %282 = vperm.xlu0 %1195, %v1351_v41  }
  0x5f   :  { %v92_v31 = vpop.permute.xlu2 %91 }
  0x67   :  { %v87_v42 = vpop.permute.xlu2 %86 }
  0x85   :  { %v79_v27 = vpop.f32.mrf.mxu0 }
  0x86   :  { %v116_v17 = vpop.permute.xlu1 %115  ;;  %v94_v43 = vadd.f32 %v87_v42, %v79_v27  ;;  %v1177_v27 = vld [vmem:[%s1570_s1 + $0x20] sm:$0xff] }
  0x8d   :  { %v81_v29 = vpop.f32.mrf.mxu0 }
  0x8e   :  { %v163_v18 = vpop.permute.xlu0 %162  ;;  %v118_v19 = vpop.permute.xlu1 %117  ;;  %v95_v32 = vadd.f32 %v92_v31, %v81_v29 }
  0x8f   :  { %v120_v20 = vsel %vm119_vm3, %v116_v17, %v118_v19  ;;  %v1381_v17 = vld [vmem:[%s1571_s2 + $0x10] sm:$0xff] }
  0x90   :  { %v125_v21 = vsel %vm66_vm1, %v120_v20, 0 }
  0x91   :  { %134 = vmatpush.bf16.msra.mxu1 %v125_v21 }
  0x94   :  { %1072 = vmatmul.msk.bf16.vlgmr.msra.gmra.mxu1 %vm62_vm2, %v1174_v22  ;;  %v1178_v22 = vld [vmem:[%s1570_s1 + $0x28] sm:$0xff] }
  0x96   :  { %v165_v23 = vpop.permute.xlu0 %164 }
  0x97   :  { %v167_v24 = vsel %vm166_vm4, %v163_v18, %v165_v23 }
  0x98   :  { %v172_v25 = vsel %vm66_vm1, %v167_v24, 0 }
  0x99   :  { %181 = vmatpush.bf16.msra.mxu2 %v172_v25 }
  0x9c   :  { %1079 = vmatmul.msk.bf16.vlgmr.msra.gmra.mxu2 %vm62_vm2, %v1175_v26 }
  0x9e   :  { %v215_v61 = vpop.permute.xlu0 %214 }
  0x9f   :  { %v217_v62 = vadd.f32 %v215_v61, %v1306_v0 }
 0x111   :  { %v136_v28 = vpop.f32.mrf.mxu1 }
 0x112   :  { %v141_v45 = vadd.f32 %v136_v28, %v94_v43 }
 0x119   :  { %v138_v33 = vpop.f32.mrf.mxu1 }
 0x11a   :  { %v142_v34 = vadd.f32 %v138_v33, %v95_v32  ;;  %v283_v32 = vpop.permute.xlu0 %282 }
 0x11f   :  { %v183_v30 = vpop.f32.mrf.mxu2 }
 0x120   :  { %v188_v49 = vadd.f32 %v183_v30, %v141_v45 }
 0x122   :  { %v190_v54 = vmax.f32 %v188_v49, 0.0 }
 0x127   :  { %v185_v35 = vpop.f32.mrf.mxu2 }
 0x128   :  { %v189_v36 = vadd.f32 %v185_v35, %v142_v34 }
 0x12a   :  { %v1080_v37 = vmul.f32 -1.442695, %v189_v36 }
 0x12c   :  { %1197 = vpow2.f32 %v1080_v37 }
 0x132   :  { %v1198_v39 = vpop.eup %1197 }
 0x133   :  { %v194_v40 = vadd.f32 1.0, %v1198_v39 }
 0x135   :  { %1199 = vrcp.f32 %v194_v40  ;;  %v206_v48 = vand.u32 2147483648, %v194_v40  ;;  %v204_v51 = vand.u32 2147483647, %v194_v40  ;;  %vm200_vm6 = vweird.f32 %v194_v40 }
 0x137   :  { %v207_v53 = vor.u32 1.1754944e-38, %v206_v48  ;;  %vm205_vm8 = vcmp.eq.f32.partialorder %v204_v51, 8.507059e+37 }
 0x13b   :  { %v1200_v44 = vpop.eup %1199 }
 0x13c   :  { %v196_v46 = vmul.f32 %v1200_v44, %v194_v40  ;;  %vm201_vm5 = vweird.f32 %v1200_v44 }
 0x13d   :  { %vm202_vm7 = vmor %vm200_vm6, %vm201_vm5  ;;  %vm525_vm6 = vcmask 130048  }
 0x13e   :  { %v197_v47 = vsub.f32 1.0, %v196_v46 }
 0x140   :  { %v198_v50 = vmul.f32 %v1200_v44, %v197_v47 }
 0x142   :  { %v199_v52 = vadd.f32 %v1200_v44, %v198_v50 }
 0x144   :  { %v203_v55 = vsel %vm202_vm7, %v1200_v44, %v199_v52  ;;  %vm549_vm7 = vcmask 60416  }
 0x145   :  { %v208_v56 = vsel %vm205_vm8, %v207_v53, %v203_v55 }
 0x146   :  { %v210_v57 = vmul.f32 %v208_v56, %v190_v54 }
 0x148   :  { %v219_v58 = vpack.c.bf16 %v210_v57, %v210_v57 }
 0x14a   :  { %v226_v59 = vsel %vm224_vm9, %v219_v58, 0 }
 0x14b   :  { %235 = vmatpush.bf16.msra.mxu3 %v226_v59 }
 0x14e   :  { %1081 = vmatmul.msk.bf16.vlgmr.msra.gmra.mxu3 %vm220_vm10, %v218_v60  ;;  %v1107_v60 = vld [vmem:[%s1572_s3 + $0x2] sm:$0x3] }
 0x1d1   :  { %v237_v63 = vpop.f32.mrf.mxu3 }
 0x1d2   :  { %v1360_v1 = vadd.f32 %v237_v63, %v217_v62 }
 0x1d4   :  { %242 = vst.msk [vmem:[#allocation2 + $0x4] sm:$0xf] %vm50_vm0, %v1360_v1  ;;  %v249_v2 = vpack.c.bf16 %v1360_v1, %v1360_v1 }
 0x1d6   :  { %v259_v3 = vsel %vm66_vm1, %v249_v2, 0 }
 0x1d7   :  { %268 = vmatpush.bf16.msrb.mxu0 %v259_v3 }
 0x1d9   :  { %v239_v5 = vpop.f32.mrf.mxu3 }
 0x1da   :  { %1090 = vmatmul.msk.bf16.vlgmr.msrb.gmra.mxu0 %vm62_vm2, %v1176_v4  ;;  %v1110_v5 = vld [vmem:[%s1576_s7 + $0x2] sm:$0x3] }
 0x1db   :  { %v290_v0 = vld [vmem:[#allocation2] sm:$0xff] }
 0x1dc   :  { %292 = vst [vmem:[#allocation1] ss:$2 sm:$0xff] %v290_v0 }
 0x1e3   :  { %v293_v6 = vld.sshfl [vmem:[#allocation1] sm:$0xff pattern:$0x75316420]  ;;  %v294_v7 = vld.sshfl [vmem:[#allocation1 + $0x8] sm:$0xff pattern:$0x75316420] }
 0x1e4   :  { %338 = vst [vmem:[#allocation1] ss:$2 sm:$0xff] %v290_v0  ;;  %v298_v12 = vpack.c.bf16 %v294_v7, %v294_v7  ;;  %v297_v13 = vpack.c.bf16 %v293_v6, %v293_v6  ;;  %v1411_v0 = vld [vmem:[%s1569_s0 + $0x4] sm:$0xf] }
 0x1eb   :  { %v340_v8 = vld.sshfl [vmem:[#allocation1 + $0x8] sm:$0xff pattern:$0x75316420]  ;;  %v339_v9 = vld.sshfl [vmem:[#allocation1] sm:$0xff pattern:$0x75316420] }
 0x1ec   :  { %v344_v10 = vpack.c.bf16 %v340_v8, %v340_v8  ;;  %v343_v11 = vpack.c.bf16 %v339_v9, %v339_v9 }
 0x1ee   :  { %354 = vrot.lane.b32.xlu2 %v344_v10, %s1241_s16  ;;  %352 = vrot.lane.b32.xlu1 %v343_v11, %s1241_s16 }
 0x1f6   :  { %308 = vrot.lane.b32.xlu2 %v298_v12, %s1240_s15  ;;  %306 = vrot.lane.b32.xlu1 %v297_v13, %s1240_s15  ;;  %v460_v12 = vld [vmem:[%s1577_s8] sm:$0xf] }
 0x1fe   :  { %404 = vperm.xlu2 %1194, %v1106_v15   ;;  %277 = vperm.xlu1 %1196, %v1381_v17  }
 0x248   :  { %v355_v18 = vpop.permute.xlu2 %354 }
 0x250   :  { %v309_v23 = vpop.permute.xlu2 %308 }
 0x257   :  { %v270_v28 = vpop.f32.mrf.mxu0 }
 0x258   :  { %v405_v61 = vpop.permute.xlu2 %404 }
 0x259   :  { %v407_v62 = vadd.f32 %v405_v61, %v1360_v1 }
 0x25f   :  { %v272_v31 = vpop.f32.mrf.mxu0 }
 0x260   :  { %v353_v19 = vpop.permute.xlu1 %352  ;;  %v286_v33 = vadd.f32 %v283_v32, %v272_v31 }
 0x261   :  { %v356_v20 = vsel %vm166_vm4, %v353_v19, %v355_v18 }
 0x262   :  { %v361_v21 = vsel %vm66_vm1, %v356_v20, 0 }
 0x263   :  { %370 = vmatpush.bf16.msrb.mxu2 %v361_v21 }
 0x266   :  { %1104 = vmatmul.msk.bf16.vlgmr.msrb.gmra.mxu2 %vm62_vm2, %v1178_v22 }
 0x268   :  { %v307_v24 = vpop.permute.xlu1 %306 }
 0x269   :  { %v310_v25 = vsel %vm119_vm3, %v307_v24, %v309_v23  ;;  %v707_v24 = vld [vmem:[%s1573_s4] sm:$0xf] }
 0x26a   :  { %v315_v26 = vsel %vm66_vm1, %v310_v25, 0 }
 0x26b   :  { %324 = vmatpush.bf16.msrb.mxu1 %v315_v26 }
 0x26e   :  { %1097 = vmatmul.msk.bf16.vlgmr.msrb.gmra.mxu1 %vm62_vm2, %v1177_v27  ;;  %v432_v27 = vld [vmem:[%s1574_s5] sm:$0xf] }
 0x270   :  { %v278_v42 = vpop.permute.xlu1 %277 }
 0x271   :  { %v285_v43 = vadd.f32 %v278_v42, %v270_v28 }
 0x2e9   :  { %v372_v29 = vpop.f32.mrf.mxu2 }
 0x2eb   :  { %v326_v30 = vpop.f32.mrf.mxu1 }
 0x2ec   :  { %v331_v45 = vadd.f32 %v326_v30, %v285_v43 }
 0x2ee   :  { %v377_v49 = vadd.f32 %v372_v29, %v331_v45 }
 0x2f0   :  { %v379_v54 = vmax.f32 %v377_v49, 0.0  ;;  %v1167_v49 = vld [vmem:[%s1576_s7 + $0x2] sm:$0x3] }
 0x2f1   :  { %v374_v36 = vpop.f32.mrf.mxu2 }
 0x2f3   :  { %v328_v34 = vpop.f32.mrf.mxu1 }
 0x2f4   :  { %v332_v35 = vadd.f32 %v328_v34, %v286_v33 }
 0x2f6   :  { %v378_v37 = vadd.f32 %v374_v36, %v332_v35 }
 0x2f8   :  { %v1105_v38 = vmul.f32 -1.442695, %v378_v37 }
 0x2fa   :  { %1201 = vpow2.f32 %v1105_v38 }
 0x300   :  { %v1202_v39 = vpop.eup %1201 }
 0x301   :  { %v383_v40 = vadd.f32 1.0, %v1202_v39 }
 0x303   :  { %1203 = vrcp.f32 %v383_v40  ;;  %v395_v48 = vand.u32 2147483648, %v383_v40  ;;  %v393_v51 = vand.u32 2147483647, %v383_v40  ;;  %vm389_vm12 = vweird.f32 %v383_v40 }
 0x305   :  { %v396_v53 = vor.u32 1.1754944e-38, %v395_v48  ;;  %vm394_vm14 = vcmp.eq.f32.partialorder %v393_v51, 8.507059e+37 }
 0x309   :  { %v1204_v44 = vpop.eup %1203 }
 0x30a   :  { %v385_v46 = vmul.f32 %v1204_v44, %v383_v40  ;;  %vm390_vm11 = vweird.f32 %v1204_v44 }
 0x30b   :  { %vm391_vm13 = vmor %vm389_vm12, %vm390_vm11 }
 0x30c   :  { %v386_v47 = vsub.f32 1.0, %v385_v46 }
 0x30e   :  { %v387_v50 = vmul.f32 %v1204_v44, %v386_v47 }
 0x310   :  { %v388_v52 = vadd.f32 %v1204_v44, %v387_v50  ;;  %v1244_v50 = vmov 1.0  }
 0x312   :  { %v392_v55 = vsel %vm391_vm13, %v1204_v44, %v388_v52  ;;  %v37_v44 = vlaneseq  ;;  %v558_v52 = vpack.c.bf16 %v1411_v0, %v1411_v0 }
 0x313   :  { %v397_v56 = vsel %vm394_vm14, %v396_v53, %v392_v55  ;;  %v1181_v55 = vld [vmem:[%s1570_s1 + $0x10] sm:$0xff] }
 0x314   :  { %v399_v57 = vmul.f32 %v397_v56, %v379_v54  ;;  %v38_v45 = vshrl.u32 %v37_v44, 7  ;;  %v41_v46 = vand.u32 127, %v37_v44  ;;  %v568_v53 = vsel %vm66_vm1, %v558_v52, 0  ;;  %v1180_v54 = vld [vmem:[%s1570_s1 + $0x8] sm:$0xff]  ;;  %v1472_v56 = vld [vmem:[%s1575_s6] sm:$0xff] }
 0x316   :  { %v410_v58 = vpack.c.bf16 %v399_v57, %v399_v57  ;;  %v39_v47 = vadd.s32 8, %v38_v45  ;;  %v42_v48 = vmul.u32 2, %v41_v46 }
 0x318   :  { %v415_v59 = vsel %vm224_vm9, %v410_v58, 0  ;;  %vm1445_vm15 = vcmp.eq.s32.totalorder %v39_v47, %v42_v48  ;;  %vm1452_vm5 = vcmp.eq.s32.totalorder %v38_v45, %v42_v48 }
 0x319   :  { %424 = vmatpush.bf16.msrb.mxu3 %v415_v59 }
 0x31c   :  { %1108 = vmatmul.msk.bf16.vlgmr.msrb.gmra.mxu3 %vm220_vm10, %v1107_v60 }
 0x31d   :  { %1113 = vmatpush.msk.msra.mxu3 %vm1445_vm15, %v1244_v50 }
 0x31f   :  { %1114 = vmatpush.msk.msra.mxu3 %vm1452_vm5, %v1244_v50 }
 0x321   :  { %577 = vmatpush.bf16.msrb.mxu3 %v568_v53 }
 0x39f   :  { %v426_v63 = vpop.f32.mrf.mxu3 }
 0x3a0   :  { %v430_v2 = vadd.f32 %v426_v63, %v407_v62  ;;  %v1179_v62 = vld [vmem:[%s1570_s1] sm:$0xff] }
 0x3a2   :  { %v433_v3 = vpack.c.bf16 %v430_v2, %v430_v2  ;;  %459 = vst.msk [vmem:[#allocation2 + $0x4] sm:$0xf] %vm50_vm0, %v430_v2 }
 0x3a4   :  { %435 = vrot.lane.b32.xlu2 %v433_v3, %s1243_s26  ;;  %v467_v4 = vsel %vm66_vm1, %v433_v3, 0 }
 0x3a5   :  { %476 = vmatpush.bf16.msra.mxu1 %v467_v4 }
 0x3a7   :  { %v428_v1 = vpop.f32.mrf.mxu3 }
 0x3a8   :  { %1111 = vmatmul.msk.bf16.vlgmr.msra.gmra.mxu1 %vm62_vm2, %v1110_v5 }
 0x3a9   :  { %v489_v6 = vld [vmem:[#allocation2] sm:$0xff] }
 0x3aa   :  { %553 = vst.msk [vmem:[#allocation2 + $0x4] sm:$0xf] %vm50_vm0, %v1411_v0 }
 0x3ab   :  { %491 = vst [vmem:[#allocation1] ss:$2 sm:$0xff] %v489_v6 }
 0x3b1   :  { %v598_v7 = vld [vmem:[#allocation2] sm:$0xff] }
 0x3b2   :  { %v493_v8 = vld.sshfl [vmem:[#allocation1 + $0x8] sm:$0xff pattern:$0x75316420]  ;;  %v492_v9 = vld.sshfl [vmem:[#allocation1] sm:$0xff pattern:$0x75316420] }
 0x3b3   :  { %v497_v10 = vpack.c.bf16 %v493_v8, %v493_v8  ;;  %v496_v11 = vpack.c.bf16 %v492_v9, %v492_v9  ;;  %600 = vst [vmem:[#allocation1] ss:$2 sm:$0xff] %v598_v7 }
 0x3b5   :  { %502 = vrot.lane.b32.xlu1 %v497_v10, %s1240_s15  ;;  %500 = vrot.lane.b32.xlu0 %v496_v11, %s1240_s15 }
 0x3ba   :  { %v601_v13 = vld.sshfl [vmem:[#allocation1] sm:$0xff pattern:$0x75316420]  ;;  %v602_v15 = vld.sshfl [vmem:[#allocation1 + $0x8] sm:$0xff pattern:$0x75316420] }
 0x3bb   :  { %v605_v18 = vpack.c.bf16 %v601_v13, %v601_v13  ;;  %v606_v19 = vpack.c.bf16 %v602_v15, %v602_v15  ;;  %645 = vst [vmem:[#allocation1] ss:$2 sm:$0xff] %v598_v7 }
 0x3bd   :  { %614 = vrot.lane.b32.xlu1 %v605_v18, %s1240_s15  ;;  %484 = vperm.xlu0 %1195, %v460_v12  }
 0x3be   :  { %616 = vrot.lane.b32.xlu2 %v606_v19, %s1240_s15 }
 0x3c2   :  { %v647_v20 = vld.sshfl [vmem:[#allocation1 + $0x8] sm:$0xff pattern:$0x75316420]  ;;  %v646_v21 = vld.sshfl [vmem:[#allocation1] sm:$0xff pattern:$0x75316420] }
 0x3c3   :  { %v651_v22 = vpack.c.bf16 %v647_v20, %v647_v20  ;;  %v650_v23 = vpack.c.bf16 %v646_v21, %v646_v21 }
 0x3c5   :  { %661 = vrot.lane.b32.xlu1 %v651_v22, %s1241_s16  ;;  %659 = vrot.lane.b32.xlu0 %v650_v23, %s1241_s16 }
 0x3c6   :  { %591 = vperm.xlu2 %1194, %v1324_v14  }
 0x3cd   :  { %710 = vperm.xlu1 %1196, %v707_v24   ;;  %586 = vperm.xlu0 %1195, %v1330_v16   ;;  %v488_v16 = vld [vmem:[%s1576_s7] sm:$0x3] }
 0x3fe   :  { %v436_v25 = vpop.permute.xlu2 %435 }
 0x3ff   :  { %v441_v26 = vsel %vm66_vm1, %v436_v25, 0 }
 0x400   :  { %450 = vmatpush.bf16.msra.mxu0 %v441_v26 }
 0x403   :  { %1109 = vmatmul.msk.bf16.vlgmr.msra.gmra.mxu0 %vm62_vm2, %v432_v27 }
 0x418   :  { %v617_v33 = vpop.permute.xlu2 %616 }
 0x420   :  { %v592_v1 = vpop.permute.xlu2 %591 }
 0x425   :  { %v478_v28 = vpop.f32.mrf.mxu1 }
 0x427   :  { %v503_v29 = vpop.permute.xlu1 %502  ;;  %v501_v14 = vpop.permute.xlu0 %500 }
 0x428   :  { %v504_v30 = vsel %vm119_vm3, %v501_v14, %v503_v29 }
 0x429   :  { %v509_v31 = vsel %vm66_vm1, %v504_v30, 0 }
 0x42a   :  { %518 = vmatpush.bf16.msra.mxu2 %v509_v31 }
 0x42d   :  { %1112 = vmatmul.msk.bf16.vlgmr.msra.gmra.mxu2 %vm62_vm2, %v488_v16  ;;  %v480_v32 = vpop.f32.mrf.mxu1 }
 0x42f   :  { %v615_v34 = vpop.permute.xlu1 %614  ;;  %v485_v35 = vpop.permute.xlu0 %484 }
 0x430   :  { %v618_v36 = vsel %vm119_vm3, %v615_v34, %v617_v33  ;;  %v487_v37 = vadd.f32 %v485_v35, %v478_v28  ;;  %v714_v34 = vld [vmem:[%s1572_s3] sm:$0x3] }
 0x431   :  { %v623_v38 = vsel %vm66_vm1, %v618_v36, 0 }
 0x432   :  { %632 = vmatpush.bf16.msrb.mxu0 %v623_v38 }
 0x435   :  { %1128 = vmatmul.msk.bf16.vlgmr.msrb.gmra.mxu0 %vm62_vm2, %v1180_v54 }
 0x437   :  { %v662_v39 = vpop.permute.xlu1 %661  ;;  %v660_v40 = vpop.permute.xlu0 %659 }
 0x438   :  { %v663_v42 = vsel %vm166_vm4, %v660_v40, %v662_v39 }
 0x439   :  { %v668_v43 = vsel %vm66_vm1, %v663_v42, 0  ;;  %v1182_v42 = vld [vmem:[%s1570_s1 + $0x18] sm:$0xff] }
 0x43a   :  { %677 = vmatpush.bf16.msrb.mxu1 %v668_v43 }
 0x43d   :  { %1135 = vmatmul.msk.bf16.vlgmr.msrb.gmra.mxu1 %vm62_vm2, %v1181_v55  ;;  %v1162_v55 = vld [vmem:[%s1573_s4 + $0x4] sm:$0xf] }
 0x43f   :  { %v587_v18 = vpop.permute.xlu0 %586  ;;  %v711_v35 = vpop.permute.xlu1 %710 }
 0x440   :  { %v713_v36 = vadd.f32 %v1411_v0, %v711_v35 }
 0x480   :  { %v452_v57 = vpop.f32.mrf.mxu0 }
 0x481   :  { %v456_v58 = vadd.f32 %v452_v57, %v1472_v56 }
 0x483   :  { %458 = vst.msk [vmem:[%s1579_s10] sm:$0xff] %vm119_vm3, %v456_v58 }
 0x488   :  { %v454_v59 = vpop.f32.mrf.mxu0 }
 0x4b0   :  { %v520_v60 = vpop.f32.mrf.mxu2 }
 0x4b1   :  { %v524_v61 = vadd.f32 %v520_v60, %v487_v37 }
 0x4b2   :  { %v634_v3 = vpop.f32.mrf.mxu0 }
 0x4b3   :  { %1115 = vmatmul.msk.f32.vlgmr.msra.gmra.mxu3 %vm525_vm6, %v524_v61 }
 0x4b8   :  { %v522_v63 = vpop.f32.mrf.mxu2 }
 0x4ba   :  { %v679_v5 = vpop.f32.mrf.mxu1  ;;  %v636_v8 = vpop.f32.mrf.mxu0 }
 0x4bb   :  { %1121 = vmatmul.msk.bf16.vlgmr.msrb.gmra.mxu3 %vm62_vm2, %v1179_v62 }
 0x4c2   :  { %v681_v10 = vpop.f32.mrf.mxu1 }
 0x536   :  { %v546_v2 = vpop.f32.mrf.mxu3 }
 0x537   :  { %550 = vst.msk [vmem:[#allocation3] sm:$0xf] %vm549_vm7, %v546_v2  ;;  %v1184_v2 = vld [vmem:[%s1570_s1 + $0x28] sm:$0xff] }
 0x53e   :  { %v579_v4 = vpop.f32.mrf.mxu3 }
 0x53f   :  { %v594_v19 = vadd.f32 %v587_v18, %v579_v4 }
 0x541   :  { %v639_v21 = vadd.f32 %v634_v3, %v594_v19 }
 0x543   :  { %v684_v25 = vadd.f32 %v679_v5, %v639_v21 }
 0x545   :  { %v686_v14 = vmax.f32 %v684_v25, 0.0 }
 0x546   :  { %v581_v6 = vpop.f32.mrf.mxu3 }
 0x547   :  { %v595_v7 = vadd.f32 %v592_v1, %v581_v6 }
 0x549   :  { %v640_v9 = vadd.f32 %v636_v8, %v595_v7 }
 0x54b   :  { %v685_v11 = vadd.f32 %v681_v10, %v640_v9 }
 0x54d   :  { %v1136_v12 = vmul.f32 -1.442695, %v685_v11 }
 0x54f   :  { %1205 = vpow2.f32 %v1136_v12 }
 0x555   :  { %v1206_v13 = vpop.eup %1205 }
 0x556   :  { %v690_v15 = vadd.f32 1.0, %v1206_v13 }
 0x558   :  { %1207 = vrcp.f32 %v690_v15  ;;  %v702_v24 = vand.u32 2147483648, %v690_v15  ;;  %v700_v27 = vand.u32 2147483647, %v690_v15  ;;  %vm696_vm11 = vweird.f32 %v690_v15 }
 0x55a   :  { %v703_v29 = vor.u32 1.1754944e-38, %v702_v24  ;;  %vm701_vm13 = vcmp.eq.f32.partialorder %v700_v27, 8.507059e+37 }
 0x55e   :  { %v1208_v20 = vpop.eup %1207 }
 0x55f   :  { %v692_v22 = vmul.f32 %v1208_v20, %v690_v15  ;;  %vm697_vm8 = vweird.f32 %v1208_v20 }
 0x560   :  { %vm698_vm12 = vmor %vm696_vm11, %vm697_vm8 }
 0x561   :  { %v693_v23 = vsub.f32 1.0, %v692_v22 }
 0x563   :  { %v694_v26 = vmul.f32 %v1208_v20, %v693_v23 }
 0x565   :  { %v695_v28 = vadd.f32 %v1208_v20, %v694_v26 }
 0x567   :  { %v699_v30 = vsel %vm698_vm12, %v1208_v20, %v695_v28 }
 0x568   :  { %v704_v31 = vsel %vm701_vm13, %v703_v29, %v699_v30 }
 0x569   :  { %v706_v16 = vmul.f32 %v704_v31, %v686_v14 }
 0x56b   :  { %v715_v32 = vpack.c.bf16 %v706_v16, %v706_v16 }
 0x56d   :  { %v720_v33 = vsel %vm224_vm9, %v715_v32, 0 }
 0x56e   :  { %729 = vmatpush.bf16.msrb.mxu2 %v720_v33 }
 0x571   :  { %1137 = vmatmul.msk.bf16.vlgmr.msrb.gmra.mxu2 %vm220_vm10, %v714_v34  ;;  %v1163_v34 = vld [vmem:[%s1572_s3 + $0x2] sm:$0x3] }
 0x5f4   :  { %v731_v37 = vpop.f32.mrf.mxu2 }
 0x5f5   :  { %v1492_v38 = vadd.f32 %v731_v37, %v713_v36 }
 0x5f7   :  { %736 = vst.msk [vmem:[#allocation2 + $0x4] sm:$0xf] %vm50_vm0, %v1492_v38  ;;  %v741_v39 = vpack.c.bf16 %v1492_v38, %v1492_v38 }
 0x5f9   :  { %v751_v40 = vsel %vm66_vm1, %v741_v39, 0 }
 0x5fa   :  { %760 = vmatpush.bf16.msra.mxu3 %v751_v40 }
 0x5fc   :  { %v733_v43 = vpop.f32.mrf.mxu2 }
 0x5fd   :  { %1146 = vmatmul.msk.bf16.vlgmr.msra.gmra.mxu3 %vm62_vm2, %v1182_v42 }
 0x5fe   :  { %v781_v0 = vld [vmem:[#allocation2] sm:$0xff] }
 0x5ff   :  { %783 = vst [vmem:[#allocation1] ss:$2 sm:$0xff] %v781_v0 }
 0x606   :  { %v785_v44 = vld.sshfl [vmem:[#allocation1 + $0x8] sm:$0xff pattern:$0x75316420]  ;;  %v784_v45 = vld.sshfl [vmem:[#allocation1] sm:$0xff pattern:$0x75316420] }
 0x607   :  { %v789_v46 = vpack.c.bf16 %v785_v44, %v785_v44  ;;  %v788_v47 = vpack.c.bf16 %v784_v45, %v784_v45  ;;  %828 = vst [vmem:[#allocation1] ss:$2 sm:$0xff] %v781_v0  ;;  %v948_v45 = vld [vmem:[%s1577_s8] sm:$0xf] }
 0x609   :  { %799 = vrot.lane.b32.xlu0 %v789_v46, %s1240_s15  ;;  %797 = vrot.lane.b32.xlu2 %v788_v47, %s1240_s15 }
 0x60e   :  { %v829_v48 = vld.sshfl [vmem:[#allocation1] sm:$0xff pattern:$0x75316420]  ;;  %v830_v52 = vld.sshfl [vmem:[#allocation1 + $0x8] sm:$0xff pattern:$0x75316420] }
 0x60f   :  { %v833_v53 = vpack.c.bf16 %v829_v48, %v829_v48  ;;  %v834_v54 = vpack.c.bf16 %v830_v52, %v830_v52 }
 0x611   :  { %774 = vperm.xlu0 %1195, %v1351_v41   ;;  %842 = vrot.lane.b32.xlu1 %v833_v53, %s1241_s16  ;;  %v1183_v41 = vld [vmem:[%s1570_s1 + $0x20] sm:$0xff] }
 0x612   :  { %844 = vrot.lane.b32.xlu2 %v834_v54, %s1241_s16 }
 0x619   :  { %769 = vperm.xlu1 %1196, %v1381_v17  }
 0x61a   :  { %893 = vperm.xlu2 %1194, %v1162_v55  }
 0x663   :  { %v798_v57 = vpop.permute.xlu2 %797 }
 0x66c   :  { %v845_v61 = vpop.permute.xlu2 %844 }
 0x674   :  { %v894_v35 = vpop.permute.xlu2 %893 }
 0x675   :  { %v896_v36 = vadd.f32 %v894_v35, %v1492_v38 }
 0x67b   :  { %v800_v58 = vpop.permute.xlu0 %799 }
 0x67c   :  { %v801_v59 = vsel %vm119_vm3, %v798_v57, %v800_v58  ;;  %v975_v57 = vld [vmem:[%s1576_s7] sm:$0x3] }
 0x67d   :  { %v806_v60 = vsel %vm66_vm1, %v801_v59, 0  ;;  %v920_v59 = vld [vmem:[%s1574_s5] sm:$0xf]  ;;  %s1041_s5 = sshll.u32 %s1245_s23, 4  ;;  %s1042_s5 = int_to_ptr.vmem [resolvable:$true] %s1041_s5 }
 0x67e   :  { %815 = vmatpush.bf16.msra.mxu0 %v806_v60 }
 0x680   :  { %v762_v3 = vpop.f32.mrf.mxu3 }
 0x681   :  { %1153 = vmatmul.msk.bf16.vlgmr.msra.gmra.mxu0 %vm62_vm2, %v1183_v41 }
 0x683   :  { %v843_v62 = vpop.permute.xlu1 %842  ;;  %v775_v6 = vpop.permute.xlu0 %774 }
 0x684   :  { %v846_v63 = vsel %vm166_vm4, %v843_v62, %v845_v61 }
 0x685   :  { %v851_v17 = vsel %vm66_vm1, %v846_v63, 0 }
 0x686   :  { %860 = vmatpush.bf16.msra.mxu1 %v851_v17 }
 0x688   :  { %v764_v1 = vpop.f32.mrf.mxu3 }
 0x689   :  { %1160 = vmatmul.msk.bf16.vlgmr.msra.gmra.mxu1 %vm62_vm2, %v1184_v2  ;;  %v778_v8 = vadd.f32 %v775_v6, %v764_v1 }
 0x68b   :  { %v770_v18 = vpop.permute.xlu1 %769 }
 0x68c   :  { %v777_v20 = vadd.f32 %v770_v18, %v762_v3 }
 0x6fe   :  { %v817_v4 = vpop.f32.mrf.mxu0 }
 0x6ff   :  { %v822_v22 = vadd.f32 %v817_v4, %v777_v20 }
 0x706   :  { %v862_v5 = vpop.f32.mrf.mxu1  ;;  %v819_v7 = vpop.f32.mrf.mxu0 }
 0x707   :  { %v823_v9 = vadd.f32 %v819_v7, %v778_v8  ;;  %v867_v25 = vadd.f32 %v862_v5, %v822_v22 }
 0x709   :  { %v869_v14 = vmax.f32 %v867_v25, 0.0 }
 0x70e   :  { %v864_v10 = vpop.f32.mrf.mxu1 }
 0x70f   :  { %v868_v11 = vadd.f32 %v864_v10, %v823_v9 }
 0x711   :  { %v1161_v12 = vmul.f32 -1.442695, %v868_v11 }
 0x713   :  { %1209 = vpow2.f32 %v1161_v12 }
 0x719   :  { %v1210_v13 = vpop.eup %1209 }
 0x71a   :  { %v873_v15 = vadd.f32 1.0, %v1210_v13 }
 0x71c   :  { %1211 = vrcp.f32 %v873_v15  ;;  %v885_v24 = vand.u32 2147483648, %v873_v15  ;;  %v883_v27 = vand.u32 2147483647, %v873_v15  ;;  %vm879_vm14 = vweird.f32 %v873_v15 }
 0x71e   :  { %v886_v29 = vor.u32 1.1754944e-38, %v885_v24  ;;  %vm884_vm11 = vcmp.eq.f32.partialorder %v883_v27, 8.507059e+37 }
 0x722   :  { %v1212_v19 = vpop.eup %1211 }
 0x723   :  { %v875_v21 = vmul.f32 %v1212_v19, %v873_v15  ;;  %vm880_vm4 = vweird.f32 %v1212_v19 }
 0x724   :  { %vm881_vm8 = vmor %vm879_vm14, %vm880_vm4 }
 0x725   :  { %v876_v23 = vsub.f32 1.0, %v875_v21 }
 0x727   :  { %v877_v26 = vmul.f32 %v1212_v19, %v876_v23 }
 0x729   :  { %v878_v28 = vadd.f32 %v1212_v19, %v877_v26 }
 0x72b   :  { %v882_v30 = vsel %vm881_vm8, %v1212_v19, %v878_v28 }
 0x72c   :  { %v887_v31 = vsel %vm884_vm11, %v886_v29, %v882_v30 }
 0x72d   :  { %v889_v16 = vmul.f32 %v887_v31, %v869_v14 }
 0x72f   :  { %v898_v32 = vpack.c.bf16 %v889_v16, %v889_v16 }
 0x731   :  { %v903_v33 = vsel %vm224_vm9, %v898_v32, 0 }
 0x732   :  { %912 = vmatpush.bf16.msra.mxu2 %v903_v33 }
 0x735   :  { %1164 = vmatmul.msk.bf16.vlgmr.msra.gmra.mxu2 %vm220_vm10, %v1163_v34 }
 0x736   :  { %1170 = vmatpush.msk.msrb.mxu2 %vm1445_vm15, %v1244_v50 }
 0x738   :  { %1171 = vmatpush.msk.msrb.mxu2 %vm1452_vm5, %v1244_v50 }
 0x7b8   :  { %v914_v37 = vpop.f32.mrf.mxu2 }
 0x7b9   :  { %v918_v39 = vadd.f32 %v914_v37, %v896_v36 }
 0x7bb   :  { %v921_v40 = vpack.c.bf16 %v918_v39, %v918_v39  ;;  %947 = vst.msk [vmem:[#allocation2 + $0x4] sm:$0xf] %vm50_vm0, %v918_v39 }
 0x7bd   :  { %923 = vrot.lane.b32.xlu2 %v921_v40, %s1243_s26  ;;  %v954_v42 = vsel %vm66_vm1, %v921_v40, 0 }
 0x7be   :  { %963 = vmatpush.bf16.msrb.mxu0 %v954_v42 }
 0x7c0   :  { %v916_v43 = vpop.f32.mrf.mxu2 }
 0x7c1   :  { %1168 = vmatmul.msk.bf16.vlgmr.msrb.gmra.mxu0 %vm62_vm2, %v1167_v49 }
 0x7c2   :  { %v976_v50 = vld [vmem:[#allocation2] sm:$0xff] }
 0x7c3   :  { %978 = vst [vmem:[#allocation1] ss:$2 sm:$0xff] %v976_v50 }
 0x7ca   :  { %v980_v51 = vld.sshfl [vmem:[#allocation1 + $0x8] sm:$0xff pattern:$0x75316420]  ;;  %v979_v38 = vld.sshfl [vmem:[#allocation1] sm:$0xff pattern:$0x75316420] }
 0x7cb   :  { %v984_v0 = vpack.c.bf16 %v980_v51, %v980_v51  ;;  %v983_v44 = vpack.c.bf16 %v979_v38, %v979_v38 }
 0x7cd   :  { %989 = vrot.lane.b32.xlu1 %v984_v0, %s1240_s15  ;;  %987 = vrot.lane.b32.xlu0 %v983_v44, %s1240_s15 }
 0x7d5   :  { %971 = vperm.xlu0 %1195, %v948_v45  }
 0x817   :  { %v924_v46 = vpop.permute.xlu2 %923 }
 0x818   :  { %v929_v47 = vsel %vm66_vm1, %v924_v46, 0 }
 0x819   :  { %938 = vmatpush.bf16.msrb.mxu3 %v929_v47 }
 0x81c   :  { %1165 = vmatmul.msk.bf16.vlgmr.msrb.gmra.mxu3 %vm62_vm2, %v920_v59 }
 0x83e   :  { %v965_v48 = vpop.f32.mrf.mxu0 }
 0x83f   :  { %v990_v52 = vpop.permute.xlu1 %989  ;;  %v988_v53 = vpop.permute.xlu0 %987 }
 0x840   :  { %v991_v54 = vsel %vm119_vm3, %v988_v53, %v990_v52 }
 0x841   :  { %v996_v55 = vsel %vm66_vm1, %v991_v54, 0 }
 0x842   :  { %1005 = vmatpush.bf16.msrb.mxu1 %v996_v55 }
 0x845   :  { %1169 = vmatmul.msk.bf16.vlgmr.msrb.gmra.mxu1 %vm62_vm2, %v975_v57 }
 0x846   :  { %v967_v58 = vpop.f32.mrf.mxu0 }
 0x847   :  { %v972_v60 = vpop.permute.xlu0 %971 }
 0x848   :  { %v974_v41 = vadd.f32 %v972_v60, %v965_v48 }
 0x89f   :  { %v940_v17 = vpop.f32.mrf.mxu3 }
 0x8a0   :  { %v944_v2 = vadd.f32 %v940_v17, %v1472_v56 }
 0x8a2   :  { %1166 = vst.msk [vmem:[%s1579_s10 + $0x8] sm:$0xff] %vm119_vm3, %v944_v2 }
 0x8a7   :  { %v942_v3 = vpop.f32.mrf.mxu3 }
 0x8c2   :  { %v1007_v61 = vpop.f32.mrf.mxu1 }
 0x8c3   :  { %v1011_v62 = vadd.f32 %v1007_v61, %v974_v41 }
 0x8c5   :  { %1172 = vmatmul.msk.f32.vlgmr.msrb.gmra.mxu2 %vm525_vm6, %v1011_v62 }
 0x8ca   :  { %v1009_v63 = vpop.f32.mrf.mxu1 }
 0x948   :  { %v1032_v4 = vpop.f32.mrf.mxu2 }
 0x949   :  { %1036 = vst.msk [vmem:[#allocation3 + $0x4] sm:$0xf] %vm549_vm7, %v1032_v4 }
 0x94a   :  { %1049 = dma.vmem_to_hbm [thread:$0]  %s1042_s5, 128, %s1044_s27, [#allocation4], %s1246_s28, %s1246_s28, %s1247_s29  }
 0x94b   :  { %1237 = dma.done.wait [#allocation4], 128  }
 0x94c   :  { %1238 = vsyncadd [#allocation4], 4294967168 }
 0x94d   :  { %1058 = vsyncpa [#allocation4], 1 }

</bundles_post_ra>
